<compile_context>
chip_gen: v6e
topology: v6e:2x2x1
jax: 0.10.0
libtpu: 0.0.40
codegen_flags: <defaults>
</compile_context>

<pallas_src>
import jax
import jax.numpy as jnp
from jax import lax
from jax.experimental import pallas as pl
from jax.experimental.pallas import tpu as pltpu
import numpy as np

# ----------------------------- config ---------------------------------------
N, CIN, COUT, H, W = 2, 8, 16, 16, 16
HW = H * W
GROUPS = 4
REDUCTION = 8
CR = COUT // REDUCTION
EPS = 1e-5
KH = KW = 3
CENTER = (KH * KW) // 2          # row-major index of the (dy,dx)=(0,0) tap

# packed per-channel parameter columns
_B1, _G1, _BE1, _B2, _G2, _BE2, _BR, _BSE2 = range(8)
_WSE1 = 8                        # cols [8, 8+CR)
_WSE2T = 8 + CR                  # cols [8+CR, 8+2*CR)
_BSE1 = 8 + 2 * CR               # cols [8+2*CR, 8+3*CR)  (any row; row 0 read)
_NPARAM = 8 + 3 * CR

# Tap order groups taps that share lane rotations so few rolled copies are live.
_TAPS = [(-1, -1), (-1, 1), (1, -1), (1, 1),
         (0, -1), (0, 1),
         (-1, 0), (1, 0),
         (0, 0)]


def _silu(x):
    return x * jax.nn.sigmoid(x)


# ----------------------------- in-kernel helpers -----------------------------
def _build_patches(h, patch_ref, c, masks):
    """Reflect-padded 3x3 im2col in channel-major layout.

    h: (c, HW) image (lane dim = flattened H*W).  Writes rows of patch_ref so
    that patch_ref[((dy+1)*3 + (dx+1))*c + ci, p] equals the reflect-padded
    pixel h[ci, y(p)+dy, x(p)+dx].  Spatial shifts are lane rotations
    (pltpu.roll -> XLU); reflection at the border selects the opposite-sign
    rotation via the precomputed (host-side) lane masks.
    """
    at_x0, at_x1, at_y0, at_y1 = masks
    rolls = {(0, 0): h}

    def get_roll(dy, dx):
        if (dy, dx) not in rolls:
            off = dy * W + dx
            rolls[(dy, dx)] = pltpu.roll(h, (-off) % HW, 1)
        return rolls[(dy, dx)]

    def sel_x(dy, dx):
        if dx == 0:
            return get_roll(dy, 0)
        flip = at_x0 if dx == -1 else at_x1
        return jnp.where(flip, get_roll(dy, -dx), get_roll(dy, dx))

    for dy, dx in _TAPS:
        if dy == 0:
            patch = sel_x(0, dx)
        else:
            flip = at_y0 if dy == -1 else at_y1
            patch = jnp.where(flip, sel_x(-dy, dx), sel_x(dy, dx))
        r0 = ((dy + 1) * 3 + (dx + 1)) * c
        patch_ref[r0:r0 + c, :] = patch


def _group_norm_cmajor(h, gamma, beta, blk_scaled):
    """GroupNorm on channel-major h (C, HW); gamma/beta (C, 1).

    blk_scaled is the (C, C) block-diagonal group-membership matrix with the
    1/(cpg*HW) scale folded in host-side.  Both statistics (sum, sum-of-sq)
    are aggregated with ONE tiny matmul.  Biased variance (matches
    nn.GroupNorm).
    """
    ch_sum = jnp.sum(h, axis=1, keepdims=True)             # (C, 1) lane reduce
    ch_sq = jnp.sum(h * h, axis=1, keepdims=True)          # (C, 1)
    stats = jnp.concatenate([ch_sum, ch_sq], axis=1)       # (C, 2)
    agg = jnp.dot(blk_scaled, stats, preferred_element_type=jnp.float32)
    mean = agg[:, 0:1]
    ex2 = agg[:, 1:2]
    var = ex2 - mean * mean
    rstd = lax.rsqrt(var + EPS)
    return (h - mean) * (rstd * gamma) + beta


# ----------------------------- fused kernel ----------------------------------
def residual_block_kernel(x_ref, w1a_ref, w2_ref, blk_ref, masks_ref, par_ref,
                          out_ref, patch_ref):
    x = x_ref[0]                                            # (CIN, HW)

    # precomputed edge masks (float -> bool, 4 cheap compares on loaded vregs)
    m = masks_ref[...]
    masks = (m[0:1, :] > 0.5, m[1:2, :] > 0.5,
             m[2:3, :] > 0.5, m[3:4, :] > 0.5)
    blk = blk_ref[...]                                      # (COUT, COUT), scaled

    # packed per-channel / SE parameters
    par = par_ref[...]                                      # (COUT, _NPARAM)
    b1, g1, be1 = par[:, _B1:_B1 + 1], par[:, _G1:_G1 + 1], par[:, _BE1:_BE1 + 1]
    b2, g2, be2 = par[:, _B2:_B2 + 1], par[:, _G2:_G2 + 1], par[:, _BE2:_BE2 + 1]
    br, bse2 = par[:, _BR:_BR + 1], par[:, _BSE2:_BSE2 + 1]
    wse1 = par[:, _WSE1:_WSE1 + CR]                         # (COUT, CR)
    wse2t = par[:, _WSE2T:_WSE2T + CR]                      # (COUT, CR)
    bse1 = par[0:1, _BSE1:_BSE1 + CR]                       # (1, CR)

    # ---- conv1 (3x3 reflect) + residual 1x1 fused into ONE matmul ----
    _build_patches(x, patch_ref, CIN, masks)
    hr = jnp.dot(w1a_ref[...], patch_ref[0:KH * KW * CIN, :],
                 preferred_element_type=jnp.float32)        # (2*COUT, HW)
    h1 = hr[0:COUT, :] + b1
    res = hr[COUT:2 * COUT, :] + br                         # residual branch
    h1 = _silu(_group_norm_cmajor(h1, g1, be1, blk))

    # ---- conv2 (3x3 reflect) -> GroupNorm ----
    _build_patches(h1, patch_ref, COUT, masks)
    h2 = jnp.dot(w2_ref[...], patch_ref[...],
                 preferred_element_type=jnp.float32) + b2
    h2 = _group_norm_cmajor(h2, g2, be2, blk)

    # ---- Squeeze-Excitation gate (VPU broadcasts + XLU reductions, no MXU) ----
    pooled = jnp.mean(h2, axis=1, keepdims=True)                              # (COUT, 1)
    t = jnp.sum(wse1 * pooled, axis=0, keepdims=True) + bse1                  # (1, CR)
    t = _silu(t)
    gate = jnp.sum(wse2t * t, axis=1, keepdims=True) + bse2                   # (COUT, 1)
    gate = jax.nn.sigmoid(gate)

    # ---- gate + residual + final SiLU ----
    y = h2 * gate + res
    out_ref[0] = _silu(y)


# ----------------------------- wrapper ---------------------------------------
def _const2d(a):
    return pl.BlockSpec(a.shape, lambda i: (0, 0))


def residual_block_pallas(x_nchw, p):
    n, cin, h, w = x_nchw.shape
    hw = h * w
    x_flat = x_nchw.reshape(n, cin, hw).astype(jnp.float32)    # NCHW, flat HW

    # conv1 weights in channel-major tap layout + folded residual 1x1
    w1_flat = jnp.transpose(p['w1'], (3, 0, 1, 2)).reshape(COUT, KH * KW * cin)
    wr_t = p['wr'].T                                           # (COUT, CIN)
    wr_fold = jnp.pad(wr_t, ((0, 0),
                             (CENTER * cin, (KH * KW - 1 - CENTER) * cin)))
    w1_aug = jnp.concatenate([w1_flat, wr_fold], axis=0).astype(jnp.float32)
    w2_flat = jnp.transpose(p['w2'], (3, 0, 1, 2)).reshape(COUT, KH * KW * COUT)

    # host-side constants: scaled group-membership matrix, reflect edge masks
    cpg = COUT // GROUPS
    gid = np.arange(COUT) // cpg
    blk_scaled = jnp.asarray(
        (gid[:, None] == gid[None, :]).astype(np.float32) / float(cpg * hw))
    col = np.arange(hw) % w
    row = np.arange(hw) // w
    masks = jnp.asarray(np.stack([col == 0, col == w - 1,
                                  row == 0, row == h - 1]).astype(np.float32))

    # packed per-channel / SE parameters: (COUT, 8 + 3*CR)
    packed = jnp.concatenate([
        p['b1'].reshape(COUT, 1), p['g1'].reshape(COUT, 1), p['be1'].reshape(COUT, 1),
        p['b2'].reshape(COUT, 1), p['g2'].reshape(COUT, 1), p['be2'].reshape(COUT, 1),
        p['br'].reshape(COUT, 1), p['bse2'].reshape(COUT, 1),
        p['wse1'],                                             # (COUT, CR)
        p['wse2'].T,                                           # (COUT, CR)
        jnp.broadcast_to(p['bse1'].reshape(1, CR), (COUT, CR)),
    ], axis=1).astype(jnp.float32)

    out_flat = pl.pallas_call(
        residual_block_kernel,
        out_shape=jax.ShapeDtypeStruct((n, COUT, hw), jnp.float32),
        grid=(n,),
        in_specs=[
            pl.BlockSpec((1, cin, hw), lambda i: (i, 0, 0)),
            _const2d(w1_aug), _const2d(w2_flat),
            _const2d(blk_scaled), _const2d(masks), _const2d(packed),
        ],
        out_specs=pl.BlockSpec((1, COUT, hw), lambda i: (i, 0, 0)),
        scratch_shapes=[pltpu.VMEM((KH * KW * COUT, hw), jnp.float32)],
        compiler_params=pltpu.CompilerParams(
            dimension_semantics=("parallel",)),
    )(x_flat, w1_aug, w2_flat, blk_scaled, masks, packed)

    return out_flat.reshape(n, COUT, h, w)                     # already NCHW


# ----------------------------- pure-JAX reference -----------------------------
def _gn_ref(x, gamma, beta, groups):
    n, h, w, c = x.shape
    xg = x.reshape(n, h * w, groups, c // groups)
    mean = xg.mean(axis=(1, 3), keepdims=True)
    var = ((xg - mean) ** 2).mean(axis=(1, 3), keepdims=True)
    xn = (xg - mean) / jnp.sqrt(var + EPS)
    return xn.reshape(n, h, w, c) * gamma.reshape(1, 1, 1, c) + beta.reshape(1, 1, 1, c)


def residual_block_ref(x_nchw, p):
    x = jnp.transpose(x_nchw, (0, 2, 3, 1)).astype(jnp.float32)
    dn = ('NHWC', 'HWIO', 'NHWC')
    xpad = jnp.pad(x, ((0, 0), (1, 1), (1, 1), (0, 0)), mode='reflect')
    h1 = lax.conv_general_dilated(xpad, p['w1'], (1, 1), 'VALID',
                                  dimension_numbers=dn) + p['b1'].reshape(1, 1, 1, -1)
    h1 = _silu(_gn_ref(h1, p['g1'][0], p['be1'][0], GROUPS))
    h1pad = jnp.pad(h1, ((0, 0), (1, 1), (1, 1), (0, 0)), mode='reflect')
    h2 = lax.conv_general_dilated(h1pad, p['w2'], (1, 1), 'VALID',
                                  dimension_numbers=dn) + p['b2'].reshape(1, 1, 1, -1)
    h2 = _gn_ref(h2, p['g2'][0], p['be2'][0], GROUPS)
    pooled = h2.mean(axis=(1, 2))
    s = _silu(pooled @ p['wse1'] + p['bse1'])
    s = jax.nn.sigmoid(s @ p['wse2'] + p['bse2'])
    res = jnp.einsum('nhwc,cd->nhwd', x, p['wr']) + p['br'].reshape(1, 1, 1, -1)
    y = h2 * s[:, None, None, :] + res
    return jnp.transpose(_silu(y), (0, 3, 1, 2))


# ----------------------------- main -------------------------------------------
if __name__ == "__main__":
    key = jax.random.PRNGKey(0)
    ks = jax.random.split(key, 16)

    def rnd(k, shape, scale=0.1):
        return (scale * jax.random.normal(k, shape)).astype(jnp.float32)

    params = {
        # conv1: 3x3, Cin -> Cout (HWIO)
        'w1': rnd(ks[0], (KH, KW, CIN, COUT)),
        'b1': rnd(ks[1], (1, COUT), 0.05),
        'g1': jnp.ones((1, COUT), jnp.float32) + rnd(ks[2], (1, COUT), 0.05),
        'be1': rnd(ks[3], (1, COUT), 0.05),
        # conv2: 3x3, Cout -> Cout
        'w2': rnd(ks[4], (KH, KW, COUT, COUT)),
        'b2': rnd(ks[5], (1, COUT), 0.05),
        'g2': jnp.ones((1, COUT), jnp.float32) + rnd(ks[6], (1, COUT), 0.05),
        'be2': rnd(ks[7], (1, COUT), 0.05),
        # SE: Cout -> Cout/8 -> Cout  (1x1 convs as matmuls)
        'wse1': rnd(ks[8], (COUT, CR)),
        'bse1': rnd(ks[9], (1, CR), 0.05),
        'wse2': rnd(ks[10], (CR, COUT)),
        'bse2': rnd(ks[11], (1, COUT), 0.05),
        # residual 1x1 conv: Cin -> Cout
        'wr': rnd(ks[12], (CIN, COUT)),
        'br': rnd(ks[13], (1, COUT), 0.05),
    }

    x = jax.random.normal(ks[14], (N, CIN, H, W), dtype=jnp.float32)

    out = jax.block_until_ready(residual_block_pallas(x, params))
    ref = jax.block_until_ready(residual_block_ref(x, params))

    assert out.shape == (N, COUT, H, W)
    np.testing.assert_allclose(np.asarray(out), np.asarray(ref),
                               rtol=1e-4, atol=1e-4)
    print("KERNEL_OK")
</pallas_src>

<mosaic_0001>
module attributes {stable_mosaic.version = 11 : i64} {
  func.func @residual_block_kernel(%arg0: i32, %arg1: memref<1x8x256xf32, #tpu.memory_space<vmem>>, %arg2: memref<32x72xf32, #tpu.memory_space<vmem>>, %arg3: memref<16x144xf32, #tpu.memory_space<vmem>>, %arg4: memref<16x16xf32, #tpu.memory_space<vmem>>, %arg5: memref<4x256xf32, #tpu.memory_space<vmem>>, %arg6: memref<16x14xf32, #tpu.memory_space<vmem>>, %arg7: memref<1x16x256xf32, #tpu.memory_space<vmem>>, %arg8: memref<144x256xf32, #tpu.memory_space<vmem>>) attributes {dimension_semantics = [#tpu.dimension_semantics<parallel>], iteration_bounds = array<i64: 2>, scalar_prefetch = 0 : i64, scratch_operands = 1 : i64, tpu.core_type = #tpu.core_type<tc>, window_params = [{transform_indices = @transform_0, window_bounds = array<i64: 1, 8, 256>}, {pipeline_mode = #tpu.pipeline_mode<synchronous>, transform_indices = @transform_1, window_bounds = array<i64: 32, 72>}, {pipeline_mode = #tpu.pipeline_mode<synchronous>, transform_indices = @transform_2, window_bounds = array<i64: 16, 144>}, {pipeline_mode = #tpu.pipeline_mode<synchronous>, transform_indices = @transform_3, window_bounds = array<i64: 16, 16>}, {pipeline_mode = #tpu.pipeline_mode<synchronous>, transform_indices = @transform_4, window_bounds = array<i64: 4, 256>}, {pipeline_mode = #tpu.pipeline_mode<synchronous>, transform_indices = @transform_5, window_bounds = array<i64: 16, 14>}, {transform_indices = @transform_6, window_bounds = array<i64: 1, 16, 256>}]} {
    %c0 = arith.constant 0 : index
    %c0_0 = arith.constant 0 : index
    %c0_1 = arith.constant 0 : index
    %0 = vector.load %arg1[%c0, %c0_0, %c0_1] : memref<1x8x256xf32, #tpu.memory_space<vmem>>, vector<1x8x256xf32>
    %1 = vector.shape_cast %0 : vector<1x8x256xf32> to vector<8x256xf32>
    %c0_2 = arith.constant 0 : index
    %c0_3 = arith.constant 0 : index
    %2 = vector.load %arg5[%c0_2, %c0_3] : memref<4x256xf32, #tpu.memory_space<vmem>>, vector<4x256xf32>
    %3 = vector.extract_strided_slice %2 {offsets = [0, 0], sizes = [1, 256], strides = [1, 1]} : vector<4x256xf32> to vector<1x256xf32>
    %cst = arith.constant 5.000000e-01 : f32
    %4 = vector.broadcast %cst : f32 to vector<1x256xf32>
    %5 = arith.cmpf ogt, %3, %4 : vector<1x256xf32>
    %6 = vector.extract_strided_slice %2 {offsets = [1, 0], sizes = [1, 256], strides = [1, 1]} : vector<4x256xf32> to vector<1x256xf32>
    %cst_4 = arith.constant 5.000000e-01 : f32
    %7 = vector.broadcast %cst_4 : f32 to vector<1x256xf32>
    %8 = arith.cmpf ogt, %6, %7 : vector<1x256xf32>
    %9 = vector.extract_strided_slice %2 {offsets = [2, 0], sizes = [1, 256], strides = [1, 1]} : vector<4x256xf32> to vector<1x256xf32>
    %cst_5 = arith.constant 5.000000e-01 : f32
    %10 = vector.broadcast %cst_5 : f32 to vector<1x256xf32>
    %11 = arith.cmpf ogt, %9, %10 : vector<1x256xf32>
    %12 = vector.extract_strided_slice %2 {offsets = [3, 0], sizes = [1, 256], strides = [1, 1]} : vector<4x256xf32> to vector<1x256xf32>
    %cst_6 = arith.constant 5.000000e-01 : f32
    %13 = vector.broadcast %cst_6 : f32 to vector<1x256xf32>
    %14 = arith.cmpf ogt, %12, %13 : vector<1x256xf32>
    %c0_7 = arith.constant 0 : index
    %c0_8 = arith.constant 0 : index
    %15 = vector.load %arg4[%c0_7, %c0_8] : memref<16x16xf32, #tpu.memory_space<vmem>>, vector<16x16xf32>
    %c0_9 = arith.constant 0 : index
    %c0_10 = arith.constant 0 : index
    %16 = vector.load %arg6[%c0_9, %c0_10] : memref<16x14xf32, #tpu.memory_space<vmem>>, vector<16x14xf32>
    %17 = vector.extract_strided_slice %16 {offsets = [0, 0], sizes = [16, 1], strides = [1, 1]} : vector<16x14xf32> to vector<16x1xf32>
    %18 = vector.extract_strided_slice %16 {offsets = [0, 1], sizes = [16, 1], strides = [1, 1]} : vector<16x14xf32> to vector<16x1xf32>
    %19 = vector.extract_strided_slice %16 {offsets = [0, 2], sizes = [16, 1], strides = [1, 1]} : vector<16x14xf32> to vector<16x1xf32>
    %20 = vector.extract_strided_slice %16 {offsets = [0, 3], sizes = [16, 1], strides = [1, 1]} : vector<16x14xf32> to vector<16x1xf32>
    %21 = vector.extract_strided_slice %16 {offsets = [0, 4], sizes = [16, 1], strides = [1, 1]} : vector<16x14xf32> to vector<16x1xf32>
    %22 = vector.extract_strided_slice %16 {offsets = [0, 5], sizes = [16, 1], strides = [1, 1]} : vector<16x14xf32> to vector<16x1xf32>
    %23 = vector.extract_strided_slice %16 {offsets = [0, 6], sizes = [16, 1], strides = [1, 1]} : vector<16x14xf32> to vector<16x1xf32>
    %24 = vector.extract_strided_slice %16 {offsets = [0, 7], sizes = [16, 1], strides = [1, 1]} : vector<16x14xf32> to vector<16x1xf32>
    %25 = vector.extract_strided_slice %16 {offsets = [0, 8], sizes = [16, 2], strides = [1, 1]} : vector<16x14xf32> to vector<16x2xf32>
    %26 = vector.extract_strided_slice %16 {offsets = [0, 10], sizes = [16, 2], strides = [1, 1]} : vector<16x14xf32> to vector<16x2xf32>
    %27 = vector.extract_strided_slice %16 {offsets = [0, 12], sizes = [1, 2], strides = [1, 1]} : vector<16x14xf32> to vector<1x2xf32>
    %c239_i32 = arith.constant 239 : i32
    %28 = tpu.dynamic_rotate %1 by %c239_i32 dim 1 : vector<8x256xf32>, i32 -> vector<8x256xf32>
    %c241_i32 = arith.constant 241 : i32
    %29 = tpu.dynamic_rotate %1 by %c241_i32 dim 1 : vector<8x256xf32>, i32 -> vector<8x256xf32>
    %30 = vector.shape_cast %5 : vector<1x256xi1> to vector<1x256xi1>
    %31 = vector.broadcast %30 : vector<1x256xi1> to vector<8x256xi1>
    %32 = arith.select %31, %28, %29 : vector<8x256xi1>, vector<8x256xf32>
    %c15_i32 = arith.constant 15 : i32
    %33 = tpu.dynamic_rotate %1 by %c15_i32 dim 1 : vector<8x256xf32>, i32 -> vector<8x256xf32>
    %c17_i32 = arith.constant 17 : i32
    %34 = tpu.dynamic_rotate %1 by %c17_i32 dim 1 : vector<8x256xf32>, i32 -> vector<8x256xf32>
    %35 = vector.shape_cast %5 : vector<1x256xi1> to vector<1x256xi1>
    %36 = vector.broadcast %35 : vector<1x256xi1> to vector<8x256xi1>
    %37 = arith.select %36, %33, %34 : vector<8x256xi1>, vector<8x256xf32>
    %38 = vector.shape_cast %11 : vector<1x256xi1> to vector<1x256xi1>
    %39 = vector.broadcast %38 : vector<1x256xi1> to vector<8x256xi1>
    %40 = arith.select %39, %32, %37 : vector<8x256xi1>, vector<8x256xf32>
    %c0_11 = arith.constant 0 : index
    %c0_12 = arith.constant 0 : index
    %41 = vector.load %arg8[%c0_11, %c0_12] : memref<144x256xf32, #tpu.memory_space<vmem>>, vector<8x256xf32>
    tpu.vector_store %arg8[%c0_11, %c0_12], %40 {strides = array<i32>} : memref<144x256xf32, #tpu.memory_space<vmem>>, vector<8x256xf32>,
    %42 = vector.shape_cast %8 : vector<1x256xi1> to vector<1x256xi1>
    %43 = vector.broadcast %42 : vector<1x256xi1> to vector<8x256xi1>
    %44 = arith.select %43, %29, %28 : vector<8x256xi1>, vector<8x256xf32>
    %45 = vector.shape_cast %8 : vector<1x256xi1> to vector<1x256xi1>
    %46 = vector.broadcast %45 : vector<1x256xi1> to vector<8x256xi1>
    %47 = arith.select %46, %34, %33 : vector<8x256xi1>, vector<8x256xf32>
    %48 = vector.shape_cast %11 : vector<1x256xi1> to vector<1x256xi1>
    %49 = vector.broadcast %48 : vector<1x256xi1> to vector<8x256xi1>
    %50 = arith.select %49, %44, %47 : vector<8x256xi1>, vector<8x256xf32>
    %c16 = arith.constant 16 : index
    %c0_13 = arith.constant 0 : index
    %51 = vector.load %arg8[%c16, %c0_13] : memref<144x256xf32, #tpu.memory_space<vmem>>, vector<8x256xf32>
    tpu.vector_store %arg8[%c16, %c0_13], %50 {strides = array<i32>} : memref<144x256xf32, #tpu.memory_space<vmem>>, vector<8x256xf32>,
    %52 = vector.shape_cast %5 : vector<1x256xi1> to vector<1x256xi1>
    %53 = vector.broadcast %52 : vector<1x256xi1> to vector<8x256xi1>
    %54 = arith.select %53, %33, %34 : vector<8x256xi1>, vector<8x256xf32>
    %55 = vector.shape_cast %5 : vector<1x256xi1> to vector<1x256xi1>
    %56 = vector.broadcast %55 : vector<1x256xi1> to vector<8x256xi1>
    %57 = arith.select %56, %28, %29 : vector<8x256xi1>, vector<8x256xf32>
    %58 = vector.shape_cast %14 : vector<1x256xi1> to vector<1x256xi1>
    %59 = vector.broadcast %58 : vector<1x256xi1> to vector<8x256xi1>
    %60 = arith.select %59, %54, %57 : vector<8x256xi1>, vector<8x256xf32>
    %c48 = arith.constant 48 : index
    %c0_14 = arith.constant 0 : index
    %61 = vector.load %arg8[%c48, %c0_14] : memref<144x256xf32, #tpu.memory_space<vmem>>, vector<8x256xf32>
    tpu.vector_store %arg8[%c48, %c0_14], %60 {strides = array<i32>} : memref<144x256xf32, #tpu.memory_space<vmem>>, vector<8x256xf32>,
    %62 = vector.shape_cast %8 : vector<1x256xi1> to vector<1x256xi1>
    %63 = vector.broadcast %62 : vector<1x256xi1> to vector<8x256xi1>
    %64 = arith.select %63, %34, %33 : vector<8x256xi1>, vector<8x256xf32>
    %65 = vector.shape_cast %8 : vector<1x256xi1> to vector<1x256xi1>
    %66 = vector.broadcast %65 : vector<1x256xi1> to vector<8x256xi1>
    %67 = arith.select %66, %29, %28 : vector<8x256xi1>, vector<8x256xf32>
    %68 = vector.shape_cast %14 : vector<1x256xi1> to vector<1x256xi1>
    %69 = vector.broadcast %68 : vector<1x256xi1> to vector<8x256xi1>
    %70 = arith.select %69, %64, %67 : vector<8x256xi1>, vector<8x256xf32>
    %c64 = arith.constant 64 : index
    %c0_15 = arith.constant 0 : index
    %71 = vector.load %arg8[%c64, %c0_15] : memref<144x256xf32, #tpu.memory_space<vmem>>, vector<8x256xf32>
    tpu.vector_store %arg8[%c64, %c0_15], %70 {strides = array<i32>} : memref<144x256xf32, #tpu.memory_space<vmem>>, vector<8x256xf32>,
    %c255_i32 = arith.constant 255 : i32
    %72 = tpu.dynamic_rotate %1 by %c255_i32 dim 1 : vector<8x256xf32>, i32 -> vector<8x256xf32>
    %c1_i32 = arith.constant 1 : i32
    %73 = tpu.dynamic_rotate %1 by %c1_i32 dim 1 : vector<8x256xf32>, i32 -> vector<8x256xf32>
    %74 = vector.shape_cast %5 : vector<1x256xi1> to vector<1x256xi1>
    %75 = vector.broadcast %74 : vector<1x256xi1> to vector<8x256xi1>
    %76 = arith.select %75, %72, %73 : vector<8x256xi1>, vector<8x256xf32>
    %c24 = arith.constant 24 : index
    %c0_16 = arith.constant 0 : index
    %77 = vector.load %arg8[%c24, %c0_16] : memref<144x256xf32, #tpu.memory_space<vmem>>, vector<8x256xf32>
    tpu.vector_store %arg8[%c24, %c0_16], %76 {strides = array<i32>} : memref<144x256xf32, #tpu.memory_space<vmem>>, vector<8x256xf32>,
    %78 = vector.shape_cast %8 : vector<1x256xi1> to vector<1x256xi1>
    %79 = vector.broadcast %78 : vector<1x256xi1> to vector<8x256xi1>
    %80 = arith.select %79, %73, %72 : vector<8x256xi1>, vector<8x256xf32>
    %c40 = arith.constant 40 : index
    %c0_17 = arith.constant 0 : index
    %81 = vector.load %arg8[%c40, %c0_17] : memref<144x256xf32, #tpu.memory_space<vmem>>, vector<8x256xf32>
    tpu.vector_store %arg8[%c40, %c0_17], %80 {strides = array<i32>} : memref<144x256xf32, #tpu.memory_space<vmem>>, vector<8x256xf32>,
    %c240_i32 = arith.constant 240 : i32
    %82 = tpu.dynamic_rotate %1 by %c240_i32 dim 1 : vector<8x256xf32>, i32 -> vector<8x256xf32>
    %c16_i32 = arith.constant 16 : i32
    %83 = tpu.dynamic_rotate %1 by %c16_i32 dim 1 : vector<8x256xf32>, i32 -> vector<8x256xf32>
    %84 = vector.shape_cast %11 : vector<1x256xi1> to vector<1x256xi1>
    %85 = vector.broadcast %84 : vector<1x256xi1> to vector<8x256xi1>
    %86 = arith.select %85, %82, %83 : vector<8x256xi1>, vector<8x256xf32>
    %c8 = arith.constant 8 : index
    %c0_18 = arith.constant 0 : index
    %87 = vector.load %arg8[%c8, %c0_18] : memref<144x256xf32, #tpu.memory_space<vmem>>, vector<8x256xf32>
    tpu.vector_store %arg8[%c8, %c0_18], %86 {strides = array<i32>} : memref<144x256xf32, #tpu.memory_space<vmem>>, vector<8x256xf32>,
    %88 = vector.shape_cast %14 : vector<1x256xi1> to vector<1x256xi1>
    %89 = vector.broadcast %88 : vector<1x256xi1> to vector<8x256xi1>
    %90 = arith.select %89, %83, %82 : vector<8x256xi1>, vector<8x256xf32>
    %c56 = arith.constant 56 : index
    %c0_19 = arith.constant 0 : index
    %91 = vector.load %arg8[%c56, %c0_19] : memref<144x256xf32, #tpu.memory_space<vmem>>, vector<8x256xf32>
    tpu.vector_store %arg8[%c56, %c0_19], %90 {strides = array<i32>} : memref<144x256xf32, #tpu.memory_space<vmem>>, vector<8x256xf32>,
    %c32 = arith.constant 32 : index
    %c0_20 = arith.constant 0 : index
    %92 = vector.load %arg8[%c32, %c0_20] : memref<144x256xf32, #tpu.memory_space<vmem>>, vector<8x256xf32>
    tpu.vector_store %arg8[%c32, %c0_20], %1 {strides = array<i32>} : memref<144x256xf32, #tpu.memory_space<vmem>>, vector<8x256xf32>,
    %c0_21 = arith.constant 0 : index
    %c0_22 = arith.constant 0 : index
    %93 = vector.load %arg2[%c0_21, %c0_22] : memref<32x72xf32, #tpu.memory_space<vmem>>, vector<32x72xf32>
    %c0_23 = arith.constant 0 : index
    %c0_24 = arith.constant 0 : index
    %94 = vector.load %arg8[%c0_23, %c0_24] : memref<144x256xf32, #tpu.memory_space<vmem>>, vector<72x256xf32>
    %cst_25 = arith.constant dense<0.000000e+00> : vector<32x256xf32>
    %95 = tpu.matmul %93, %94, %cst_25 {dimension_numbers = #tpu.dot_dimension_numbers<[1], [0], [0], [1], [0, 0, 1, 1], [], []>} : vector<32x72xf32>, vector<72x256xf32>, vector<32x256xf32> -> vector<32x256xf32>
    %96 = vector.extract_strided_slice %95 {offsets = [0, 0], sizes = [16, 256], strides = [1, 1]} : vector<32x256xf32> to vector<16x256xf32>
    %97 = vector.broadcast %17 : vector<16x1xf32> to vector<16x256xf32>
    %98 = arith.addf %96, %97 : vector<16x256xf32>
    %99 = vector.extract_strided_slice %95 {offsets = [16, 0], sizes = [16, 256], strides = [1, 1]} : vector<32x256xf32> to vector<16x256xf32>
    %100 = vector.broadcast %23 : vector<16x1xf32> to vector<16x256xf32>
    %101 = arith.addf %99, %100 : vector<16x256xf32>
    %cst_26 = arith.constant dense<0.000000e+00> : vector<16xf32>
    %102 = vector.multi_reduction <add>, %98, %cst_26 [1] : vector<16x256xf32> to vector<16xf32>
    %103 = vector.shape_cast %102 : vector<16xf32> to vector<16x1xf32>
    %104 = arith.mulf %98, %98 : vector<16x256xf32>
    %cst_27 = arith.constant dense<0.000000e+00> : vector<16xf32>
    %105 = vector.multi_reduction <add>, %104, %cst_27 [1] : vector<16x256xf32> to vector<16xf32>
    %106 = vector.shape_cast %105 : vector<16xf32> to vector<16x1xf32>
    %107 = tpu.concatenate %103, %106 in 1 : vector<16x1xf32>, vector<16x1xf32> -> vector<16x2xf32>
    %cst_28 = arith.constant dense<0.000000e+00> : vector<16x2xf32>
    %108 = tpu.matmul %15, %107, %cst_28 {dimension_numbers = #tpu.dot_dimension_numbers<[1], [0], [0], [1], [0, 0, 1, 1], [], []>} : vector<16x16xf32>, vector<16x2xf32>, vector<16x2xf32> -> vector<16x2xf32>
    %109 = vector.extract_strided_slice %108 {offsets = [0, 0], sizes = [16, 1], strides = [1, 1]} : vector<16x2xf32> to vector<16x1xf32>
    %110 = vector.extract_strided_slice %108 {offsets = [0, 1], sizes = [16, 1], strides = [1, 1]} : vector<16x2xf32> to vector<16x1xf32>
    %111 = arith.mulf %109, %109 : vector<16x1xf32>
    %112 = arith.subf %110, %111 : vector<16x1xf32>
    %cst_29 = arith.constant 9.99999974E-6 : f32
    %113 = vector.broadcast %cst_29 : f32 to vector<16x1xf32>
    %114 = arith.addf %112, %113 : vector<16x1xf32>
    %115 = math.rsqrt %114 : vector<16x1xf32>
    %116 = vector.broadcast %109 : vector<16x1xf32> to vector<16x256xf32>
    %117 = arith.subf %98, %116 : vector<16x256xf32>
    %118 = arith.mulf %115, %18 : vector<16x1xf32>
    %119 = vector.broadcast %118 : vector<16x1xf32> to vector<16x256xf32>
    %120 = arith.mulf %117, %119 : vector<16x256xf32>
    %121 = vector.broadcast %19 : vector<16x1xf32> to vector<16x256xf32>
    %122 = arith.addf %120, %121 : vector<16x256xf32>
    %123 = arith.negf %122 : vector<16x256xf32>
    %124 = math.exp %123 : vector<16x256xf32>
    %cst_30 = arith.constant 1.000000e+00 : f32
    %125 = vector.broadcast %cst_30 : f32 to vector<16x256xf32>
    %126 = arith.addf %125, %124 : vector<16x256xf32>
    %127 = arith.divf %125, %126 : vector<16x256xf32>
    %128 = arith.mulf %122, %127 : vector<16x256xf32>
    %c239_i32_31 = arith.constant 239 : i32
    %129 = tpu.dynamic_rotate %128 by %c239_i32_31 dim 1 : vector<16x256xf32>, i32 -> vector<16x256xf32>
    %c241_i32_32 = arith.constant 241 : i32
    %130 = tpu.dynamic_rotate %128 by %c241_i32_32 dim 1 : vector<16x256xf32>, i32 -> vector<16x256xf32>
    %131 = vector.shape_cast %5 : vector<1x256xi1> to vector<1x256xi1>
    %132 = vector.broadcast %131 : vector<1x256xi1> to vector<16x256xi1>
    %133 = arith.select %132, %129, %130 : vector<16x256xi1>, vector<16x256xf32>
    %c15_i32_33 = arith.constant 15 : i32
    %134 = tpu.dynamic_rotate %128 by %c15_i32_33 dim 1 : vector<16x256xf32>, i32 -> vector<16x256xf32>
    %c17_i32_34 = arith.constant 17 : i32
    %135 = tpu.dynamic_rotate %128 by %c17_i32_34 dim 1 : vector<16x256xf32>, i32 -> vector<16x256xf32>
    %136 = vector.shape_cast %5 : vector<1x256xi1> to vector<1x256xi1>
    %137 = vector.broadcast %136 : vector<1x256xi1> to vector<16x256xi1>
    %138 = arith.select %137, %134, %135 : vector<16x256xi1>, vector<16x256xf32>
    %139 = vector.shape_cast %11 : vector<1x256xi1> to vector<1x256xi1>
    %140 = vector.broadcast %139 : vector<1x256xi1> to vector<16x256xi1>
    %141 = arith.select %140, %133, %138 : vector<16x256xi1>, vector<16x256xf32>
    %c0_35 = arith.constant 0 : index
    %c0_36 = arith.constant 0 : index
    %142 = vector.load %arg8[%c0_35, %c0_36] : memref<144x256xf32, #tpu.memory_space<vmem>>, vector<16x256xf32>
    tpu.vector_store %arg8[%c0_35, %c0_36], %141 {strides = array<i32>} : memref<144x256xf32, #tpu.memory_space<vmem>>, vector<16x256xf32>,
    %143 = vector.shape_cast %8 : vector<1x256xi1> to vector<1x256xi1>
    %144 = vector.broadcast %143 : vector<1x256xi1> to vector<16x256xi1>
    %145 = arith.select %144, %130, %129 : vector<16x256xi1>, vector<16x256xf32>
    %146 = vector.shape_cast %8 : vector<1x256xi1> to vector<1x256xi1>
    %147 = vector.broadcast %146 : vector<1x256xi1> to vector<16x256xi1>
    %148 = arith.select %147, %135, %134 : vector<16x256xi1>, vector<16x256xf32>
    %149 = vector.shape_cast %11 : vector<1x256xi1> to vector<1x256xi1>
    %150 = vector.broadcast %149 : vector<1x256xi1> to vector<16x256xi1>
    %151 = arith.select %150, %145, %148 : vector<16x256xi1>, vector<16x256xf32>
    %c32_37 = arith.constant 32 : index
    %c0_38 = arith.constant 0 : index
    %152 = vector.load %arg8[%c32_37, %c0_38] : memref<144x256xf32, #tpu.memory_space<vmem>>, vector<16x256xf32>
    tpu.vector_store %arg8[%c32_37, %c0_38], %151 {strides = array<i32>} : memref<144x256xf32, #tpu.memory_space<vmem>>, vector<16x256xf32>,
    %153 = vector.shape_cast %5 : vector<1x256xi1> to vector<1x256xi1>
    %154 = vector.broadcast %153 : vector<1x256xi1> to vector<16x256xi1>
    %155 = arith.select %154, %134, %135 : vector<16x256xi1>, vector<16x256xf32>
    %156 = vector.shape_cast %5 : vector<1x256xi1> to vector<1x256xi1>
    %157 = vector.broadcast %156 : vector<1x256xi1> to vector<16x256xi1>
    %158 = arith.select %157, %129, %130 : vector<16x256xi1>, vector<16x256xf32>
    %159 = vector.shape_cast %14 : vector<1x256xi1> to vector<1x256xi1>
    %160 = vector.broadcast %159 : vector<1x256xi1> to vector<16x256xi1>
    %161 = arith.select %160, %155, %158 : vector<16x256xi1>, vector<16x256xf32>
    %c96 = arith.constant 96 : index
    %c0_39 = arith.constant 0 : index
    %162 = vector.load %arg8[%c96, %c0_39] : memref<144x256xf32, #tpu.memory_space<vmem>>, vector<16x256xf32>
    tpu.vector_store %arg8[%c96, %c0_39], %161 {strides = array<i32>} : memref<144x256xf32, #tpu.memory_space<vmem>>, vector<16x256xf32>,
    %163 = vector.shape_cast %8 : vector<1x256xi1> to vector<1x256xi1>
    %164 = vector.broadcast %163 : vector<1x256xi1> to vector<16x256xi1>
    %165 = arith.select %164, %135, %134 : vector<16x256xi1>, vector<16x256xf32>
    %166 = vector.shape_cast %8 : vector<1x256xi1> to vector<1x256xi1>
    %167 = vector.broadcast %166 : vector<1x256xi1> to vector<16x256xi1>
    %168 = arith.select %167, %130, %129 : vector<16x256xi1>, vector<16x256xf32>
    %169 = vector.shape_cast %14 : vector<1x256xi1> to vector<1x256xi1>
    %170 = vector.broadcast %169 : vector<1x256xi1> to vector<16x256xi1>
    %171 = arith.select %170, %165, %168 : vector<16x256xi1>, vector<16x256xf32>
    %c128 = arith.constant 128 : index
    %c0_40 = arith.constant 0 : index
    %172 = vector.load %arg8[%c128, %c0_40] : memref<144x256xf32, #tpu.memory_space<vmem>>, vector<16x256xf32>
    tpu.vector_store %arg8[%c128, %c0_40], %171 {strides = array<i32>} : memref<144x256xf32, #tpu.memory_space<vmem>>, vector<16x256xf32>,
    %c255_i32_41 = arith.constant 255 : i32
    %173 = tpu.dynamic_rotate %128 by %c255_i32_41 dim 1 : vector<16x256xf32>, i32 -> vector<16x256xf32>
    %c1_i32_42 = arith.constant 1 : i32
    %174 = tpu.dynamic_rotate %128 by %c1_i32_42 dim 1 : vector<16x256xf32>, i32 -> vector<16x256xf32>
    %175 = vector.shape_cast %5 : vector<1x256xi1> to vector<1x256xi1>
    %176 = vector.broadcast %175 : vector<1x256xi1> to vector<16x256xi1>
    %177 = arith.select %176, %173, %174 : vector<16x256xi1>, vector<16x256xf32>
    %c48_43 = arith.constant 48 : index
    %c0_44 = arith.constant 0 : index
    %178 = vector.load %arg8[%c48_43, %c0_44] : memref<144x256xf32, #tpu.memory_space<vmem>>, vector<16x256xf32>
    tpu.vector_store %arg8[%c48_43, %c0_44], %177 {strides = array<i32>} : memref<144x256xf32, #tpu.memory_space<vmem>>, vector<16x256xf32>,
    %179 = vector.shape_cast %8 : vector<1x256xi1> to vector<1x256xi1>
    %180 = vector.broadcast %179 : vector<1x256xi1> to vector<16x256xi1>
    %181 = arith.select %180, %174, %173 : vector<16x256xi1>, vector<16x256xf32>
    %c80 = arith.constant 80 : index
    %c0_45 = arith.constant 0 : index
    %182 = vector.load %arg8[%c80, %c0_45] : memref<144x256xf32, #tpu.memory_space<vmem>>, vector<16x256xf32>
    tpu.vector_store %arg8[%c80, %c0_45], %181 {strides = array<i32>} : memref<144x256xf32, #tpu.memory_space<vmem>>, vector<16x256xf32>,
    %c240_i32_46 = arith.constant 240 : i32
    %183 = tpu.dynamic_rotate %128 by %c240_i32_46 dim 1 : vector<16x256xf32>, i32 -> vector<16x256xf32>
    %c16_i32_47 = arith.constant 16 : i32
    %184 = tpu.dynamic_rotate %128 by %c16_i32_47 dim 1 : vector<16x256xf32>, i32 -> vector<16x256xf32>
    %185 = vector.shape_cast %11 : vector<1x256xi1> to vector<1x256xi1>
    %186 = vector.broadcast %185 : vector<1x256xi1> to vector<16x256xi1>
    %187 = arith.select %186, %183, %184 : vector<16x256xi1>, vector<16x256xf32>
    %c16_48 = arith.constant 16 : index
    %c0_49 = arith.constant 0 : index
    %188 = vector.load %arg8[%c16_48, %c0_49] : memref<144x256xf32, #tpu.memory_space<vmem>>, vector<16x256xf32>
    tpu.vector_store %arg8[%c16_48, %c0_49], %187 {strides = array<i32>} : memref<144x256xf32, #tpu.memory_space<vmem>>, vector<16x256xf32>,
    %189 = vector.shape_cast %14 : vector<1x256xi1> to vector<1x256xi1>
    %190 = vector.broadcast %189 : vector<1x256xi1> to vector<16x256xi1>
    %191 = arith.select %190, %184, %183 : vector<16x256xi1>, vector<16x256xf32>
    %c112 = arith.constant 112 : index
    %c0_50 = arith.constant 0 : index
    %192 = vector.load %arg8[%c112, %c0_50] : memref<144x256xf32, #tpu.memory_space<vmem>>, vector<16x256xf32>
    tpu.vector_store %arg8[%c112, %c0_50], %191 {strides = array<i32>} : memref<144x256xf32, #tpu.memory_space<vmem>>, vector<16x256xf32>,
    %c64_51 = arith.constant 64 : index
    %c0_52 = arith.constant 0 : index
    %193 = vector.load %arg8[%c64_51, %c0_52] : memref<144x256xf32, #tpu.memory_space<vmem>>, vector<16x256xf32>
    tpu.vector_store %arg8[%c64_51, %c0_52], %128 {strides = array<i32>} : memref<144x256xf32, #tpu.memory_space<vmem>>, vector<16x256xf32>,
    %c0_53 = arith.constant 0 : index
    %c0_54 = arith.constant 0 : index
    %194 = vector.load %arg3[%c0_53, %c0_54] : memref<16x144xf32, #tpu.memory_space<vmem>>, vector<16x144xf32>
    %c0_55 = arith.constant 0 : index
    %c0_56 = arith.constant 0 : index
    %195 = vector.load %arg8[%c0_55, %c0_56] : memref<144x256xf32, #tpu.memory_space<vmem>>, vector<144x256xf32>
    %cst_57 = arith.constant dense<0.000000e+00> : vector<16x256xf32>
    %196 = tpu.matmul %194, %195, %cst_57 {dimension_numbers = #tpu.dot_dimension_numbers<[1], [0], [0], [1], [0, 0, 1, 1], [], []>} : vector<16x144xf32>, vector<144x256xf32>, vector<16x256xf32> -> vector<16x256xf32>
    %197 = vector.broadcast %20 : vector<16x1xf32> to vector<16x256xf32>
    %198 = arith.addf %196, %197 : vector<16x256xf32>
    %cst_58 = arith.constant dense<0.000000e+00> : vector<16xf32>
    %199 = vector.multi_reduction <add>, %198, %cst_58 [1] : vector<16x256xf32> to vector<16xf32>
    %200 = vector.shape_cast %199 : vector<16xf32> to vector<16x1xf32>
    %201 = arith.mulf %198, %198 : vector<16x256xf32>
    %cst_59 = arith.constant dense<0.000000e+00> : vector<16xf32>
    %202 = vector.multi_reduction <add>, %201, %cst_59 [1] : vector<16x256xf32> to vector<16xf32>
    %203 = vector.shape_cast %202 : vector<16xf32> to vector<16x1xf32>
    %204 = tpu.concatenate %200, %203 in 1 : vector<16x1xf32>, vector<16x1xf32> -> vector<16x2xf32>
    %cst_60 = arith.constant dense<0.000000e+00> : vector<16x2xf32>
    %205 = tpu.matmul %15, %204, %cst_60 {dimension_numbers = #tpu.dot_dimension_numbers<[1], [0], [0], [1], [0, 0, 1, 1], [], []>} : vector<16x16xf32>, vector<16x2xf32>, vector<16x2xf32> -> vector<16x2xf32>
    %206 = vector.extract_strided_slice %205 {offsets = [0, 0], sizes = [16, 1], strides = [1, 1]} : vector<16x2xf32> to vector<16x1xf32>
    %207 = vector.extract_strided_slice %205 {offsets = [0, 1], sizes = [16, 1], strides = [1, 1]} : vector<16x2xf32> to vector<16x1xf32>
    %208 = arith.mulf %206, %206 : vector<16x1xf32>
    %209 = arith.subf %207, %208 : vector<16x1xf32>
    %cst_61 = arith.constant 9.99999974E-6 : f32
    %210 = vector.broadcast %cst_61 : f32 to vector<16x1xf32>
    %211 = arith.addf %209, %210 : vector<16x1xf32>
    %212 = math.rsqrt %211 : vector<16x1xf32>
    %213 = vector.broadcast %206 : vector<16x1xf32> to vector<16x256xf32>
    %214 = arith.subf %198, %213 : vector<16x256xf32>
    %215 = arith.mulf %212, %21 : vector<16x1xf32>
    %216 = vector.broadcast %215 : vector<16x1xf32> to vector<16x256xf32>
    %217 = arith.mulf %214, %216 : vector<16x256xf32>
    %218 = vector.broadcast %22 : vector<16x1xf32> to vector<16x256xf32>
    %219 = arith.addf %217, %218 : vector<16x256xf32>
    %cst_62 = arith.constant dense<0.000000e+00> : vector<16xf32>
    %220 = vector.multi_reduction <add>, %219, %cst_62 [1] : vector<16x256xf32> to vector<16xf32>
    %221 = vector.shape_cast %220 : vector<16xf32> to vector<16x1xf32>
    %cst_63 = arith.constant 2.560000e+02 : f32
    %222 = vector.broadcast %cst_63 : f32 to vector<16x1xf32>
    %223 = arith.divf %221, %222 : vector<16x1xf32>
    %224 = vector.broadcast %223 : vector<16x1xf32> to vector<16x2xf32>
    %225 = arith.mulf %25, %224 : vector<16x2xf32>
    %cst_64 = arith.constant dense<0.000000e+00> : vector<2xf32>
    %226 = vector.multi_reduction <add>, %225, %cst_64 [0] : vector<16x2xf32> to vector<2xf32>
    %227 = vector.shape_cast %226 : vector<2xf32> to vector<1x2xf32>
    %228 = arith.addf %227, %27 : vector<1x2xf32>
    %229 = arith.negf %228 : vector<1x2xf32>
    %230 = math.exp %229 : vector<1x2xf32>
    %cst_65 = arith.constant 1.000000e+00 : f32
    %231 = vector.broadcast %cst_65 : f32 to vector<1x2xf32>
    %232 = arith.addf %231, %230 : vector<1x2xf32>
    %233 = arith.divf %231, %232 : vector<1x2xf32>
    %234 = arith.mulf %228, %233 : vector<1x2xf32>
    %235 = vector.broadcast %234 : vector<1x2xf32> to vector<16x2xf32>
    %236 = arith.mulf %26, %235 : vector<16x2xf32>
    %cst_66 = arith.constant dense<0.000000e+00> : vector<16xf32>
    %237 = vector.multi_reduction <add>, %236, %cst_66 [1] : vector<16x2xf32> to vector<16xf32>
    %238 = vector.shape_cast %237 : vector<16xf32> to vector<16x1xf32>
    %239 = arith.addf %238, %24 : vector<16x1xf32>
    %240 = arith.negf %239 : vector<16x1xf32>
    %241 = math.exp %240 : vector<16x1xf32>
    %cst_67 = arith.constant 1.000000e+00 : f32
    %242 = vector.broadcast %cst_67 : f32 to vector<16x1xf32>
    %243 = arith.addf %242, %241 : vector<16x1xf32>
    %244 = arith.divf %242, %243 : vector<16x1xf32>
    %245 = vector.broadcast %244 : vector<16x1xf32> to vector<16x256xf32>
    %246 = arith.mulf %219, %245 : vector<16x256xf32>
    %247 = arith.addf %246, %101 : vector<16x256xf32>
    %248 = arith.negf %247 : vector<16x256xf32>
    %249 = math.exp %248 : vector<16x256xf32>
    %cst_68 = arith.constant 1.000000e+00 : f32
    %250 = vector.broadcast %cst_68 : f32 to vector<16x256xf32>
    %251 = arith.addf %250, %249 : vector<16x256xf32>
    %252 = arith.divf %250, %251 : vector<16x256xf32>
    %253 = arith.mulf %247, %252 : vector<16x256xf32>
    %c0_69 = arith.constant 0 : index
    %c0_70 = arith.constant 0 : index
    %c0_71 = arith.constant 0 : index
    %254 = vector.load %arg7[%c0_69, %c0_70, %c0_71] : memref<1x16x256xf32, #tpu.memory_space<vmem>>, vector<1x16x256xf32>
    %255 = vector.shape_cast %254 : vector<1x16x256xf32> to vector<16x256xf32>
    %256 = vector.shape_cast %253 : vector<16x256xf32> to vector<1x16x256xf32>
    tpu.vector_store %arg7[%c0_69, %c0_70, %c0_71], %256 {strides = array<i32>} : memref<1x16x256xf32, #tpu.memory_space<vmem>>, vector<1x16x256xf32>,
    return
  }
  func.func @transform_0(%arg0: i32) -> (i32, i32, i32) {
    %c0_i32 = arith.constant 0 : i32
    %c0_i32_0 = arith.constant 0 : i32
    %c0_i32_1 = arith.constant 0 : i32
    return %arg0, %c0_i32, %c0_i32_0 : i32, i32, i32
  }
  func.func @transform_1(%arg0: i32) -> (i32, i32) {
    %c0_i32 = arith.constant 0 : i32
    %c0_i32_0 = arith.constant 0 : i32
    %c0_i32_1 = arith.constant 0 : i32
    return %c0_i32, %c0_i32_0 : i32, i32
  }
  func.func @transform_2(%arg0: i32) -> (i32, i32) {
    %c0_i32 = arith.constant 0 : i32
    %c0_i32_0 = arith.constant 0 : i32
    %c0_i32_1 = arith.constant 0 : i32
    return %c0_i32, %c0_i32_0 : i32, i32
  }
  func.func @transform_3(%arg0: i32) -> (i32, i32) {
    %c0_i32 = arith.constant 0 : i32
    %c0_i32_0 = arith.constant 0 : i32
    %c0_i32_1 = arith.constant 0 : i32
    return %c0_i32, %c0_i32_0 : i32, i32
  }
  func.func @transform_4(%arg0: i32) -> (i32, i32) {
    %c0_i32 = arith.constant 0 : i32
    %c0_i32_0 = arith.constant 0 : i32
    %c0_i32_1 = arith.constant 0 : i32
    return %c0_i32, %c0_i32_0 : i32, i32
  }
  func.func @transform_5(%arg0: i32) -> (i32, i32) {
    %c0_i32 = arith.constant 0 : i32
    %c0_i32_0 = arith.constant 0 : i32
    %c0_i32_1 = arith.constant 0 : i32
    return %c0_i32, %c0_i32_0 : i32, i32
  }
  func.func @transform_6(%arg0: i32) -> (i32, i32, i32) {
    %c0_i32 = arith.constant 0 : i32
    %c0_i32_0 = arith.constant 0 : i32
    %c0_i32_1 = arith.constant 0 : i32
    return %arg0, %c0_i32, %c0_i32_0 : i32, i32, i32
  }
}

</mosaic_0001>

<bundles_post_ra>
// kernel: tpu_custom_call.1
= control target key start
LH: loop header
LB: loop body
LE: loop exit
PB: predicated region body
PF: predicated region fallthrough
CT: control target
= control target key end

     0   :  { %s3036_s0 = inlined_call_operand.hbm [shape: f32[2,8,256], index: 0, kind: input, shape index: {}]   ;;  %s3037_s1 = inlined_call_operand.hbm [shape: f32[32,72], index: 1, kind: input, shape index: {}]   ;;  %s3038_s2 = inlined_call_operand.hbm [shape: f32[16,144], index: 2, kind: input, shape index: {}]   ;;  %s3039_s3 = inlined_call_operand.hbm [shape: f32[16,16], index: 3, kind: input, shape index: {}]   ;;  %s3040_s4 = inlined_call_operand.hbm [shape: f32[4,256], index: 4, kind: input, shape index: {}]   ;;  %s3041_s5 = inlined_call_operand.hbm [shape: f32[16,14], index: 5, kind: input, shape index: {}]   ;;  %s3042_s6 = inlined_call_operand.hbm [shape: f32[2,16,256], index: 6, kind: output, shape index: {}]  }
   0x1   :  { %3051 = sst [smem:[#allocation23_spill]] %s3037_s1 }
   0x2   :  { %11 = vsyncpa [#allocation4], 0 }
   0x3   :  { %13 = vsyncpa [#allocation4 + $0x1], 0 }
   0x4   :  { %14 = vsyncpa [#allocation7], 0 }
   0x5   :  { %15 = vsyncpa [#allocation10], 0 }
   0x6   :  { %16 = vsyncpa [#allocation13], 0 }
   0x7   :  { %17 = vsyncpa [#allocation5], 0 }
   0x8   :  { %19 = vsyncpa [#allocation5 + $0x1], 0  ;;  %s2145_s21 = smov 0   ;;  %s2147_s22 = smov 0  }
   0x9   :  { %s2149_s23 = smov 0   ;;  %s2151_s24 = smov 0  }
   0xa LB: > { %s2078_s25 = smov [#allocation6]   ;;  %s2166_s27 = sadd.s32 4294967295, %s2076_s24   ;;  %s2076_s24 = sphi %s2151_s24, %s3104_s24   ;;  %s2072_s23 = sphi %s2149_s23, %s3103_s23   ;;  %s2068_s22 = sphi %s2147_s22, %s3102_s22   ;;  %s2064_s21 = sphi %s2145_s21, %s3101_s21  }
   0xb   : > { %s199_s26 = sshll.u32 %s2078_s25, 4  ;;  %p1582_p0 = scmp.ge.s32.totalorder %s2076_s24, 1  ;;  %s200_s26 = int_to_ptr.vmem [resolvable:$true] %s199_s26 }
   0xc   : > { %p3043_p1 = scmp.eq.s32.totalorder %s2166_s27, 0  ;;  %p187_p2 = scmp.lt.s32.totalorder %s2076_s24, 3 }
   0xd   : > { %s2079_s29 = smov [#allocation9]   ;;  %s2080_s8 = smov [#allocation8]  }
   0xe   : > { %p2171_p3 = pnand %p1582_p0, %p187_p2  ;;  %s225_s30 = sshll.u32 %s2079_s29, 4  ;;  %s2184_s30 = int_to_ptr.vmem [resolvable:$true] %s225_s30 }
   0xf   : > { %s212_s9 = sshll.u32 %s2080_s8, 4  ;;  %s1853_s11 = scalar_lea.vmem %s200_s26, 512  ;;  %s2186_s9 = int_to_ptr.vmem [resolvable:$true] %s212_s9 }
  0x10   : > { %s3052_s28 = scalar_select %p2171_p3, 1, 0 }
  0x11   : > { %p1674_p5 = pneg %p2171_p3  ;;  %p1854_p8 = scmp.ne.s32.totalorder %s200_s26, %s1853_s11 }
  0x12   : > { %p1861_p11 = scmp.lt.s32.totalorder %s200_s26, %s200_s26  ;;  %p1862_p12 = scmp.lt.s32.totalorder %s1853_s11, %s1853_s11 }
  0x13   : > { %p2180_p6 = pnand %p1674_p5, %p3043_p1 }
  0x14   : > { %p1863_p13 = por %p1862_p12, %p1861_p11 }
  0x15   : > { %p2190_p7 = pneg %p2180_p6 }
  0x17   : > { %p1856_p9 = pnand %p1854_p8, %p2190_p7 }
  0x19   : > { %p1857_p10 = pneg %p1856_p9 }
  0x1b   : > { %p1864_p0 = pnand %p1863_p13, %p1857_p10 }
  0x1d   : > { %1867 = shalt.err (!%p1864_p0)
}
  0x1e   : > { %s2081_s12 = smov 128   ;;  %s2082_s13 = smov 8  }
  0x1f   : > { %s3055_s1 = sld [smem:[#allocation23_spill]]  ;;  %s1879_s16 = scalar_lea.vmem %s2184_s30, 256 }
  0x20   : > { %p1880_p2 = scmp.ne.s32.totalorder %s2184_s30, %s1879_s16  ;;  %p1887_p9 = scmp.lt.s32.totalorder %s2184_s30, %s2184_s30 }
  0x21   : > { %p1888_p10 = scmp.lt.s32.totalorder %s1879_s16, %s1879_s16 }
  0x22   : > { %p1882_p5 = pnand %p1880_p2, %p2190_p7 }
  0x23   : > { %p1889_p11 = por %p1888_p10, %p1887_p9 }
  0x24   : > { %p1883_p8 = pneg %p1882_p5 }
  0x25   : > { %1677 = dma.hbm_to_vmem [thread:$0]  (!%p2180_p6), %s3055_s1, 512, %s200_s26, [#allocation7], %s2081_s12, %s2081_s12, %s2082_s13  }
  0x26   : > { %p1890_p12 = pnand %p1889_p11, %p1883_p8 }
  0x28   : > { %1893 = shalt.err (!%p1890_p12)
}
  0x29   : > { %1683 = dma.hbm_to_vmem [thread:$0]  (!%p2180_p6), %s3039_s3, 256, %s2184_s30, [#allocation10], %s2081_s12, %s2081_s12, %s2082_s13  }
  0x2a   : > { %s1905_s19 = scalar_lea.vmem %s2186_s9, 512  ;;  %p1913_p5 = scmp.lt.s32.totalorder %s2186_s9, %s2186_s9 }
  0x2b   : > { %p1906_p13 = scmp.ne.s32.totalorder %s2186_s9, %s1905_s19  ;;  %p1914_p8 = scmp.lt.s32.totalorder %s1905_s19, %s1905_s19 }
  0x2d   : > { %p1908_p0 = pnand %p1906_p13, %p2190_p7  ;;  %p1915_p9 = por %p1914_p8, %p1913_p5 }
  0x2f   : > { %p1909_p2 = pneg %p1908_p0 }
  0x31   : > { %p1916_p10 = pnand %p1915_p9, %p1909_p2 }
  0x33   : > { %1919 = shalt.err (!%p1916_p10)
}
  0x34   : > { %s2083_s20 = smov 256   ;;  %s2084_s25 = smov 16  }
  0x35   : > { %1680 = dma.hbm_to_vmem [thread:$0]  (!%p2180_p6), %s3038_s2, 512, %s2186_s9, [#allocation7], %s2083_s20, %s2083_s20, %s2084_s25  }
  0x36   : > { %s2085_s30 = smov [#allocation11]   ;;  %s2086_s11 = smov [#allocation12]  }
  0x37   : > { %s239_s8 = sshll.u32 %s2085_s30, 4  ;;  %s249_s14 = sshll.u32 %s2086_s11, 4  ;;  %s240_s8 = int_to_ptr.vmem [resolvable:$true] %s239_s8  ;;  %s250_s14 = int_to_ptr.vmem [resolvable:$true] %s249_s14 }
  0x38   : > { %s1931_s15 = scalar_lea.vmem %s240_s8, 128  ;;  %p1939_p0 = scmp.lt.s32.totalorder %s240_s8, %s240_s8 }
  0x39   : > { %p1932_p11 = scmp.ne.s32.totalorder %s240_s8, %s1931_s15  ;;  %p1940_p2 = scmp.lt.s32.totalorder %s1931_s15, %s1931_s15 }
  0x3b   : > { %p1934_p12 = pnand %p1932_p11, %p2190_p7  ;;  %p1941_p5 = por %p1940_p2, %p1939_p0 }
  0x3d   : > { %p1935_p13 = pneg %p1934_p12 }
  0x3f   : > { %p1942_p8 = pnand %p1941_p5, %p1935_p13 }
  0x41   : > { %1945 = shalt.err (!%p1942_p8)
}
  0x42   : > { %1686 = dma.hbm_to_vmem [thread:$0]  (!%p2180_p6), %s3040_s4, 128, %s240_s8, [#allocation10]  }
  0x43   : > { %s1957_s9 = scalar_lea.vmem %s250_s14, 256  ;;  %p1965_p11 = scmp.lt.s32.totalorder %s250_s14, %s250_s14 }
  0x44   : > { %p1958_p9 = scmp.ne.s32.totalorder %s250_s14, %s1957_s9  ;;  %p1966_p12 = scmp.lt.s32.totalorder %s1957_s9, %s1957_s9 }
  0x46   : > { %p1960_p10 = pnand %p1958_p9, %p2190_p7  ;;  %p1967_p1 = por %p1966_p12, %p1965_p11 }
  0x48   : > { %p1961_p4 = pneg %p1960_p10 }
  0x4a   : > { %p1968_p3 = pnand %p1967_p1, %p1961_p4 }
  0x4c   : > { %1971 = shalt.err (!%p1968_p3)
}
  0x4d   : > { %1689 = dma.hbm_to_vmem [thread:$0]  (!%p2180_p6), %s3041_s5, 256, %s250_s14, [#allocation13], %s2081_s12, %s2081_s12, %s2082_s13  }
  0x4e   : > { %s1581_s7 = sadd.s32 4294967294, %s2076_s24   ;;  %s2250_s10 = sadd.s32 1, %s2076_s24  }
  0x4f   : > { %s32_s20 = sadd.s32 1, %s2072_s23  ;;  %s29_s25 = ssub.s32 %s2076_s24, %s2250_s10 }
  0x50   : > { %p39_p1 = scmp.ne.s32.totalorder %s2072_s23, %s2068_s22  ;;  %p30_p3 = scmp.eq.s32.totalorder %s29_s25, 0 }
  0x51   : > { %p40_p4 = scmp.eq.s32.totalorder %s2076_s24, 0  ;;  %p45_p7 = scmp.ne.s32.totalorder %s2068_s22, %s2064_s21 }
  0x52   : > { %p174_p13 = scmp.eq.s32.totalorder %s2166_s27, 1  ;;  %p3056_p2 = scmp.eq.s32.totalorder %s2166_s27, 0 }
  0x53   : > { %s2262_s26 = scalar_select %p30_p3, %s2072_s23, %s32_s20  }
  0x54   : > { %p41_p0 = por %p40_p4, %p39_p1  ;;  %p2266_p5 = por %p3056_p2, %p45_p7 }
  0x55   : > { %p2270_p6 = por %p174_p13, %p39_p1  ;;  %p180_p8 = scmp.eq.s32.totalorder %s1581_s7, 1 }
  0x56   : > { %s3057_s29 = scalar_select %p2266_p5, 1, 0 }
  0x57   : > { %s3058_s12 = scalar_select %p2270_p6, 1, 0 }
  0x58   : > { %p1703_p9 = scmp.lt.s32.totalorder %s2076_s24, 2  ;;  %s263_s13 = sand.u32 1, %s2072_s23  }
  0x59   : > { %p2276_p10 = por %p180_p8, %p45_p7  ;;  %s1589_s8 = sshll.u32 %s263_s13, 4 }
  0x5a   : > { %s1626_s11 = sshll.u32 %s2076_s24, 8  ;;  %s267_s17 = scalar_lea.vmem [#allocation3], %s1589_s8 }
  0x5b   : > { %s3059_s30 = scalar_select %p2276_p10, 1, 0 }
  0x5c   : > { %s2284_s16 = scalar_lea.hbm %s3036_s0, %s1626_s11  ;;  %s275_s9 = sshll.u32 %s267_s17, 4  ;;  %s276_s9 = int_to_ptr.vmem [resolvable:$true] %s275_s9 }
  0x5d   : > { %p2286_p11 = pnand %p1703_p9, %p41_p0  ;;  %s264_s19 = scalar_lea.sflag [#allocation4], %s263_s13 }
  0x5e   : > { %s1972_s7 = scalar_lea.hbm %s2284_s16, 256  ;;  %s1977_s11 = scalar_lea.hbm %s3036_s0, 512 }
  0x5f   : > { %p1973_p12 = scmp.ne.s32.totalorder %s2284_s16, %s1972_s7  ;;  %p1974_p1 = pneg %p2286_p11 }
  0x60   : > { %p1978_p7 = scmp.lt.s32.totalorder %s2284_s16, %s3036_s0  ;;  %p1979_p13 = scmp.lt.s32.totalorder %s1977_s11, %s1972_s7 }
  0x61   : > { %p1975_p3 = pnand %p1974_p1, %p1973_p12 }
  0x62   : > { %p1980_p0 = por %p1979_p13, %p1978_p7 }
  0x63   : > { %p1976_p4 = pneg %p1975_p3 }
  0x65   : > { %p1981_p2 = pnand %p1980_p0, %p1976_p4 }
  0x67   : > { %1984 = shalt.err (!%p1981_p2)
}
  0x68   : > { %s1985_s15 = scalar_lea.vmem %s276_s9, 256  ;;  %s2087_s13 = smov [#allocation3]  }
  0x69   : > { %p1986_p8 = scmp.ne.s32.totalorder %s276_s9, %s1985_s15  ;;  %s1990_s17 = sshll.u32 %s2087_s13, 4  ;;  %s1991_s17 = int_to_ptr.vmem [resolvable:$false] %s1990_s17 }
  0x6a   : > { %s1992_s1 = scalar_lea.vmem %s1991_s17, 512  ;;  %p1993_p12 = scmp.lt.s32.totalorder %s276_s9, %s1991_s17 }
  0x6b   : > { %p1988_p9 = pnand %p1986_p8, %p1974_p1  ;;  %p1994_p3 = scmp.lt.s32.totalorder %s1992_s1, %s1985_s15 }
  0x6d   : > { %p1989_p10 = pneg %p1988_p9  ;;  %p1995_p6 = por %p1994_p3, %p1993_p12 }
  0x6f   : > { %p1996_p5 = pnand %p1995_p6, %p1989_p10 }
  0x71   : > { %1999 = shalt.err (!%p1996_p5)
}
  0x72   : > { %1693 = dma.hbm_to_vmem [thread:$0]  (!%p2286_p11), %s2284_s16, 256, %s276_s9, %s264_s19  }
  0x73   : > { %p3061_p4 = scmp.ne.s32.totalorder %s3052_s28, 0 }
  0x75   : > { %284 = sbr.rel (%p3061_p4) target bundleno = 2942 (0xb7e), region = 44 }
  0x7a   : > { %s2307_s7 = sand.u32 1, %s2068_s22   ;;  %p3062_p1 = scmp.ne.s32.totalorder %s3057_s29, 0 }
  0x7b   : > { %s1593_s20 = sshll.u32 %s2307_s7, 4  ;;  %s287_s25 = scalar_lea.sflag [#allocation4], %s2307_s7 }
  0x7c   : > { %s290_s11 = scalar_lea.vmem [#allocation3], %s1593_s20 }
  0x7d   : > { %2043 = dma.done.wait (%p3062_p1), %s287_s25, 256  }
  0x7e   : > { %2045 = vsyncadd (%p3062_p1), %s287_s25, 4294967040  ;;  %p3063_p5 = scmp.eq.s32.totalorder %s2166_s27, 0 }
  0x80   : > { %2047 = dma.done.wait (%p3063_p5), [#allocation7], 1024   ;;  %p3064_p6 = pmov %p3063_p5 }
  0x81   : > { %p3065_p10 = pmov %p3063_p5 }
  0x82   : > { %2049 = vsyncadd (%p3064_p6), [#allocation7], 4294966272 }
  0x83   : > { %2051 = dma.done.wait (%p3065_p10), [#allocation10], 384   ;;  %p3066_p11 = pmov %p3063_p5 }
  0x84   : > { %p3067_p7 = pmov %p3063_p5 }
  0x85   : > { %2053 = vsyncadd (%p3066_p11), [#allocation10], 4294966912 }
  0x86   : > { %2055 = dma.done.wait (%p3067_p7), [#allocation13], 256   ;;  %p3068_p13 = pmov %p3063_p5 }
  0x87   : > { %v2088_v0 = vmov 0   ;;  %v2329_v1 = vld [vmem:[%s290_s11] sm:$0xff]  ;;  %s2089_s1 = smov 113   ;;  %s2090_s28 = smov 111   ;;  %v2335_v2 = vld [vmem:[%s290_s11 + $0x8] sm:$0xff]  ;;  %v2097_v3 = vmov 0.0   ;;  %v351_v6 = vlaneseq }
  0x88   : > { %2057 = vsyncadd (%p3068_p13), [#allocation13], 4294967040  ;;  %1773 = vset.pattern.permute.xlu1 %v2088_v0  ;;  %1772 = vset.pattern.permute.xlu0 %v2088_v0  ;;  %s2091_s29 = smov 15   ;;  %s2092_s16 = smov 17   ;;  %v2366_v4 = vld [vmem:[#allocation12] sm:$0xff]  ;;  %v2368_v5 = vld [vmem:[#allocation12 + $0x8] sm:$0xff] }
  0x89   : > { %356 = vrot.lane.b32.xlu1 %v2329_v1, %s2089_s1  ;;  %347 = vrot.lane.b32.xlu0 %v2329_v1, %s2090_s28  ;;  %s2093_s9 = smov 112   ;;  %s2094_s18 = smov 16   ;;  %v341_v7 = vld [vmem:[#allocation11] sm:$0xff]  ;;  %v2372_v8 = vshrl.u32 %v351_v6, 7  ;;  %v2383_v18 = vand.u32 127, %v351_v6 }
  0x8a   : > { %s2095_s19 = smov 127   ;;  %s2096_s14 = smov 1   ;;  %619 = vmatprep.mubr.f32.mxu0 %v2097_v3  ;;  %vm342_vm0 = vcmp.gt.f32.partialorder %v341_v7, 0.5 }
  0x8b   : > { %v424_v9 = vsub.s32 1, %v2372_v8  ;;  %v428_v10 = vsub.s32 5, %v2372_v8  ;;  %v2377_v11 = vsel %vm342_vm0, 1, %v2088_v0  ;;  %v450_v14 = vsub.s32 3, %v2372_v8  ;;  %s2101_s8 = smov 125   ;;  %s2103_s15 = smov 124  }
  0x8c   : > { %v454_v15 = vsub.s32 7, %v2372_v8  ;;  %v370_v25 = vsub.s32 4, %v2372_v8  ;;  %vm360_vm1 = vcmp.lt.s32.totalorder %v2383_v18, 113  ;;  %vm353_vm2 = vcmp.lt.s32.totalorder %v2383_v18, 111  ;;  %s2104_s13 = smov 2   ;;  %s2106_s17 = smov 118  }
  0x8d   : > { %358 = vrot.lane.b32.xlu1 %v2335_v2, %s2089_s1  ;;  %349 = vrot.lane.b32.xlu0 %v2335_v2, %s2090_s28  ;;  %v429_v16 = vrot.slane %v2377_v11, %v428_v10  ;;  %v425_v17 = vrot.slane %v2377_v11, %v424_v9  ;;  %v451_v22 = vrot.slane %v2377_v11, %v450_v14  ;;  %v2395_v30 = vsub.s32 0, %v2372_v8  ;;  %s1599_s20 = sshll.u32 %s2307_s7, 5  ;;  %p3098_p2 = scmp.ne.s32.totalorder %s3058_s12, 0 }
  0x8e   : > { %v455_v21 = vrot.slane %v2377_v11, %v454_v15  ;;  %vm388_vm3 = vcmp.lt.s32.totalorder %v2383_v18, 15  ;;  %vm395_vm4 = vcmp.lt.s32.totalorder %v2383_v18, 17  ;;  %v371_v32 = vrot.slane %v2377_v11, %v370_v25  ;;  %s338_s25 = scalar_lea.vmem [#allocation14], %s1599_s20 }
  0x8f   : > { %v437_v23 = vrot.slane %v429_v16, %v424_v9  ;;  %v2387_v24 = vrot.slane %v425_v17, %v424_v9  ;;  %v2392_v29 = vrot.slane %v451_v22, %v450_v14  ;;  %v367_v40 = vrot.slane %v2377_v11, %v2395_v30  ;;  %s1460_s11 = sshll.u32 %s338_s25, 4  ;;  %s2987_s11 = int_to_ptr.vmem [resolvable:$true] %s1460_s11 }
  0x90   : > { %v463_v28 = vrot.slane %v455_v21, %v450_v14  ;;  %v379_v51 = vrot.slane %v371_v32, %v2395_v30  ;;  %vm500_vm9 = vcmp.lt.s32.totalorder %v2383_v18, 112  ;;  %vm507_vm10 = vcmp.lt.s32.totalorder %v2383_v18, 16 }
  0x91   : > { %386 = vrot.lane.b32.xlu1 %v2335_v2, %s2091_s29  ;;  %384 = vrot.lane.b32.xlu0 %v2329_v1, %s2091_s29  ;;  %vm2399_vm5 = vcmp.eq.s32.totalorder %v437_v23, 1  ;;  %vm3047_vm6 = vcmp.eq.s32.totalorder %v2387_v24, 1  ;;  %vm464_vm8 = vcmp.eq.s32.totalorder %v2392_v29, 1  ;;  %v2448_v54 = vrot.slane %v367_v40, %v2395_v30  ;;  %v520_v40 = vld [vmem:[#allocation6] sm:$0xff] }
  0x92   : > { %vm2413_vm7 = vcmp.eq.s32.totalorder %v463_v28, 1  ;;  %vm2452_vm11 = vcmp.eq.s32.totalorder %v379_v51, 1  ;;  %v406_v59 = vsub.s32 6, %v2372_v8  ;;  %v402_v10 = vsub.s32 2, %v2372_v8 }
  0x93   : > { %vm380_vm12 = vcmp.eq.s32.totalorder %v2448_v54, 1  ;;  %vm3048_vm13 = vcmp.lt.s32.totalorder %v2383_v18, 127  ;;  %vm3049_vm14 = vcmp.lt.s32.totalorder %v2383_v18, 1 }
  0x94   : > { %v407_v17 = vrot.slane %v2377_v11, %v406_v59  ;;  %v403_v8 = vrot.slane %v2377_v11, %v402_v10 }
  0x95   : > { %393 = vrot.lane.b32.xlu1 %v2335_v2, %s2092_s16  ;;  %391 = vrot.lane.b32.xlu0 %v2329_v1, %s2092_s16 }
  0x96   : > { %v415_v22 = vrot.slane %v407_v17, %v402_v10  ;;  %v2499_v32 = vrot.slane %v403_v8, %v402_v10 }
  0x98   : > { %vm2502_vm15 = vcmp.eq.s32.totalorder %v415_v22, 1  ;;  %vm416_vm0 = vcmp.eq.s32.totalorder %v2499_v32, 1  ;;  %v1039_v32 = vld [vmem:[#allocation8 + $0x10] sm:$0xff] }
  0x99   : > { %498 = vrot.lane.b32.xlu1 %v2335_v2, %s2093_s9  ;;  %496 = vrot.lane.b32.xlu0 %v2329_v1, %s2093_s9 }
  0x9d   : > { %505 = vrot.lane.b32.xlu1 %v2335_v2, %s2094_s18  ;;  %503 = vrot.lane.b32.xlu0 %v2329_v1, %s2094_s18 }
  0xa1   : > { %476 = vrot.lane.b32.xlu1 %v2335_v2, %s2095_s19  ;;  %474 = vrot.lane.b32.xlu0 %v2329_v1, %s2095_s19 }
  0xa5   : > { %483 = vrot.lane.b32.xlu1 %v2335_v2, %s2096_s14  ;;  %481 = vrot.lane.b32.xlu0 %v2329_v1, %s2096_s14 }
  0xa9   : > { %646 = vperm.xlu1 %1773, %v2366_v4   ;;  %651 = vperm.xlu0 %1772, %v2368_v5  }
  0xfb   : > { %v357_v12 = vpop.permute.xlu1 %356  ;;  %v348_v13 = vpop.permute.xlu0 %347 }
  0xff   : > { %v359_v19 = vpop.permute.xlu1 %358  ;;  %v350_v20 = vpop.permute.xlu0 %349 }
 0x100   : > { %v361_v33 = vsel %vm360_vm1, %v357_v12, %v359_v19  ;;  %v362_v34 = vsel %vm360_vm1, %v359_v19, %v357_v12  ;;  %v354_v35 = vsel %vm353_vm2, %v348_v13, %v350_v20  ;;  %v355_v36 = vsel %vm353_vm2, %v350_v20, %v348_v13 }
 0x101   : > { %v2430_v45 = vsel %vm2399_vm5, %v362_v34, %v355_v36  ;;  %v2436_v47 = vsel %vm3047_vm6, %v361_v33, %v354_v35  ;;  %v383_v12 = vsel %vm2452_vm11, %v355_v36, %v362_v34  ;;  %v382_v16 = vsel %vm380_vm12, %v354_v35, %v361_v33  ;;  %v1037_v33 = vld [vmem:[#allocation8] sm:$0xff] }
 0x103   : > { %v387_v26 = vpop.permute.xlu1 %386  ;;  %v385_v27 = vpop.permute.xlu0 %384 }
 0x104   : > { %v389_v41 = vsel %vm388_vm3, %v385_v27, %v387_v26  ;;  %v390_v42 = vsel %vm388_vm3, %v387_v26, %v385_v27 }
 0x107   : > { %v394_v37 = vpop.permute.xlu1 %393  ;;  %v392_v38 = vpop.permute.xlu0 %391 }
 0x108   : > { %v396_v43 = vsel %vm395_vm4, %v392_v38, %v394_v37  ;;  %v397_v44 = vsel %vm395_vm4, %v394_v37, %v392_v38 }
 0x109   : > { %v443_v46 = vsel %vm2399_vm5, %v396_v43, %v389_v41  ;;  %v442_v48 = vsel %vm3047_vm6, %v397_v44, %v390_v42  ;;  %v399_v58 = vsel %vm2452_vm11, %v389_v41, %v396_v43  ;;  %v398_v9 = vsel %vm380_vm12, %v390_v42, %v397_v44  ;;  %v521_v42 = vld [vmem:[#allocation6 + $0x8] sm:$0xff] }
 0x10a   : > { %v471_v49 = vsel %vm2413_vm7, %v443_v46, %v2430_v45  ;;  %v470_v50 = vsel %vm464_vm8, %v442_v48, %v2436_v47  ;;  %v467_v15 = vsel %vm2413_vm7, %v399_v58, %v383_v12  ;;  %v466_v19 = vsel %vm464_vm8, %v398_v9, %v382_v16 }
 0x10b   : > { %v499_v52 = vpop.permute.xlu1 %498  ;;  %569 = vmatprep.subr.mxu0 %v471_v49  ;;  %v497_v53 = vpop.permute.xlu0 %496  ;;  %v444_v36 = vsel %vm416_vm0, %v2436_v47, %v442_v48  ;;  %v419_v38 = vsel %vm2502_vm15, %v383_v12, %v399_v58  ;;  %v418_v41 = vsel %vm416_vm0, %v382_v16, %v398_v9  ;;  %v2556_v16 = vld [vmem:[#allocation9 + $0x8] sm:$0xff] }
 0x10c   : > { %570 = vmatpush1.msra.mxu0 %v470_v50  ;;  %v501_v60 = vsel %vm500_vm9, %v497_v53, %v499_v52  ;;  %v502_v61 = vsel %vm500_vm9, %v499_v52, %v497_v53 }
 0x10f   : > { %v506_v56 = vpop.permute.xlu1 %505  ;;  %v504_v57 = vpop.permute.xlu0 %503 }
 0x110   : > { %v508_v62 = vsel %vm507_vm10, %v504_v57, %v506_v56  ;;  %v509_v63 = vsel %vm507_vm10, %v506_v56, %v504_v57 }
 0x111   : > { %v515_v6 = vsel %vm2413_vm7, %v508_v62, %v502_v61  ;;  %v514_v7 = vsel %vm464_vm8, %v509_v63, %v501_v60  ;;  %v510_v37 = vsel %vm416_vm0, %v501_v60, %v509_v63  ;;  %v522_v63 = vld [vmem:[#allocation6 + $0x10] sm:$0xff] }
 0x112   : > { %571 = vmatprep.subr.mxu0 %v515_v6  ;;  %v523_v6 = vld [vmem:[#allocation6 + $0x18] sm:$0xff] }
 0x113   : > { %v477_v13 = vpop.permute.xlu1 %476  ;;  %572 = vmatpush1.msra.mxu0 %v514_v7  ;;  %v475_v14 = vpop.permute.xlu0 %474  ;;  %v343_v7 = vld [vmem:[#allocation9] sm:$0xff] }
 0x114   : > { %573 = vmatprep.subr.mxu0 %v467_v15  ;;  %v479_v23 = vsel %vm3048_vm13, %v475_v14, %v477_v13  ;;  %v480_v25 = vsel %vm3048_vm13, %v477_v13, %v475_v14  ;;  %vm689_vm13 = vcmask 130048  }
 0x115   : > { %574 = vmatpush1.msra.mxu0 %v466_v19 }
 0x117   : > { %v484_v20 = vpop.permute.xlu1 %483  ;;  %v482_v21 = vpop.permute.xlu0 %481 }
 0x118   : > { %v486_v26 = vsel %vm3049_vm14, %v482_v21, %v484_v20  ;;  %v487_v27 = vsel %vm3049_vm14, %v484_v20, %v482_v21  ;;  %vm686_vm14 = vcmask 7168  }
 0x119   : > { %v493_v28 = vsel %vm2399_vm5, %v486_v26, %v480_v25  ;;  %v492_v11 = vsel %vm3047_vm6, %v487_v27, %v479_v23  ;;  %v489_v34 = vsel %vm2452_vm11, %v480_v25, %v486_v26  ;;  %v488_v35 = vsel %vm380_vm12, %v479_v23, %v487_v27 }
 0x11a   : > { %575 = vmatprep.subr.mxu0 %v493_v28  ;;  %vm542_vm6 = vcmask 588800   ;;  %v3050_v25 = vmov 1  }
 0x11b   : > { %576 = vmatpush1.msra.mxu0 %v492_v11 }
 0x11c   : > { %577 = vmatprep.subr.mxu0 %v2335_v2  ;;  %v445_v2 = vsel %vm2502_vm15, %v2430_v45, %v443_v46 }
 0x11d   : > { %578 = vmatpush1.msra.mxu0 %v2329_v1  ;;  %v511_v1 = vsel %vm2502_vm15, %v502_v61, %v508_v62 }
 0x11e   : > { %579 = vmatprep.subr.mxu0 %v489_v34 }
 0x11f   : > { %580 = vmatpush1.msra.mxu0 %v488_v35 }
 0x120   : > { %581 = vmatprep.subr.mxu0 %v445_v2 }
 0x121   : > { %582 = vmatpush1.msra.mxu0 %v444_v36 }
 0x122   : > { %583 = vmatprep.subr.mxu0 %v511_v1 }
 0x123   : > { %584 = vmatpush1.msra.mxu0 %v510_v37 }
 0x124   : > { %585 = vmatprep.subr.mxu0 %v419_v38  ;;  %v652_v45 = vpop.permute.xlu0 %651  ;;  %v647_v46 = vpop.permute.xlu1 %646  ;;  %v2099_v38 = vmov 2  }
 0x125   : > { %586 = vmatpush1.msra.mxu0 %v418_v41 }
 0x126   : > { %1600 = vmatmul.mubr.msk.f32.vlgmr.msra.gmra.mxu0 %vm542_vm6, %v520_v40 }
 0x127   : > { %625 = vmatprep.mubr.f32.mxu0 %v2097_v3 }
 0x12a   : > { %1601 = vmatmul.mubr.msk.f32.gmra.mxu0 %vm542_vm6, %v521_v42 }
 0x12b   : > { %631 = vmatprep.mubr.f32.mxu0 %v2097_v3 }
 0x12e   : > { %1602 = vmatmul.mubr.msk.f32.gmra.mxu0 %vm542_vm6, %v522_v63 }
 0x12f   : > { %637 = vmatprep.mubr.f32.mxu0 %v2097_v3 }
 0x132   : > { %1603 = vmatmul.mubr.msk.f32.gmra.mxu0 %vm542_vm6, %v523_v6  ;;  %vm3080_vm6 = vcmp.lt.s32.totalorder %v2383_v18, 1 }
 0x133   : > { %1640 = vmatprep.mubr.msk.f32.mxu0 %vm689_vm13, %v343_v7 }
 0x1e6   : > { %v621_v43 = vpop.f32.mrf.mxu0 }
 0x1e7   : > { %v2534_v51 = vadd.f32 %v647_v46, %v621_v43 }
 0x1e8   : > { %v623_v44 = vpop.f32.mrf.mxu0 }
 0x1e9   : > { %v2530_v48 = vadd.f32 %v647_v46, %v623_v44  ;;  %v676_v60 = vmul.f32 %v2534_v51, %v2534_v51 }
 0x1ea   : > { %v627_v47 = vpop.f32.mrf.mxu0 }
 0x1eb   : > { %v2532_v49 = vadd.f32 %v652_v45, %v627_v47  ;;  %v677_v58 = vmul.f32 %v2530_v48, %v2530_v48  ;;  %v670_v62 = vadd.f32 %v2530_v48, %v2534_v51 }
 0x1ec   : > { %v629_v50 = vpop.f32.mrf.mxu0 }
 0x1ed   : > { %v2536_v52 = vadd.f32 %v652_v45, %v629_v50  ;;  %v678_v56 = vmul.f32 %v2532_v49, %v2532_v49  ;;  %v680_v61 = vadd.f32 %v677_v58, %v676_v60 }
 0x1ee   : > { %v2561_v3 = vpop.f32.mrf.mxu0 }
 0x1ef   : > { %v673_v53 = vadd.f32 %v2536_v52, %v2532_v49  ;;  %v679_v57 = vmul.f32 %v2536_v52, %v2536_v52 }
 0x1f0   : > { %v2563_v17 = vpop.f32.mrf.mxu0 }
 0x1f1   : > { %674 = vadd.xlane.f32.xlu1 %v673_v53  ;;  %v683_v59 = vadd.f32 %v679_v57, %v678_v56  ;;  %3077 = vst [vmem:[#allocation20_spill] sm:$0xff] %v2563_v17 }
 0x1f2   : > { %v2565_v19 = vpop.f32.mrf.mxu0 }
 0x1f3   : > { %684 = vadd.xlane.f32.xlu0 %v683_v59  ;;  %3078 = vst [vmem:[#allocation21_spill] sm:$0xff] %v2565_v19 }
 0x1f4   : > { %v2567_v8 = vpop.f32.mrf.mxu0 }
 0x1f5   : > { %681 = vadd.xlane.f32.xlu1 %v680_v61  ;;  %3079 = vst [vmem:[#allocation22_spill] sm:$0xff] %v2567_v8 }
 0x1f7   : > { %671 = vadd.xlane.f32.xlu0 %v670_v62 }
 0x27a   : > { %v675_v9 = vpop.xlane.xlu1 %674 }
 0x27c   : > { %v685_v10 = vpop.xlane.xlu0 %684 }
 0x27d   : > { %v688_v12 = vsel %vm686_vm14, %v675_v9, %v685_v10 }
 0x27e   : > { %1636 = vmatprep.subr.mxu0 %v688_v12  ;;  %v682_v13 = vpop.xlane.xlu1 %681 }
 0x27f   : > { %1637 = vmatpush3.msra.mxu0 %v688_v12 }
 0x280   : > { %v672_v14 = vpop.xlane.xlu0 %671 }
 0x281   : > { %v687_v15 = vsel %vm686_vm14, %v672_v14, %v682_v13 }
 0x282   : > { %1638 = vmatprep.subr.mxu0 %v687_v15 }
 0x283   : > { %1639 = vmatpush3.msra.mxu0 %v687_v15 }
 0x284   : > { %1641 = vmatmul.mubr.msk.f32.vlgmr.msra.gmra.mxu0 %vm689_vm13, %v2556_v16 }
 0x285   : > { %1647 = vmatprep.mubr.msk.f32.mxu0 %vm689_vm13, %v343_v7 }
 0x344   : > { %v1642_v20 = vpop.f32.mrf.mxu0 }
 0x345   : > { %v772_v21 = vmul.f32 %v1642_v20, %v1642_v20 }
 0x346   : > { %v762_v22 = vpop.f32.mrf.mxu0 }
 0x347   : > { %v771_v23 = vmul.f32 %v762_v22, %v762_v22  ;;  %777 = vrot.lane.b32.xlu0 %v772_v21, %s2096_s14 }
 0x349   : > { %775 = vrot.lane.b32.xlu1 %v771_v23, %s2096_s14 }
 0x34b   : > { %789 = vperm.xlu0 %1772, %v762_v22  }
 0x34d   : > { %794 = vperm.xlu1 %1773, %v1642_v20  }
 0x34f   : > { %1775 = vset.pattern.permute.xlu0 %v3050_v25 }
 0x351   : > { %1774 = vset.pattern.permute.xlu1 %v3050_v25 }
 0x3b9   : > { %v778_v26 = vpop.permute.xlu0 %777 }
 0x3ba   : > { %v782_v27 = vsub.f32 %v1642_v20, %v778_v26 }
 0x3bb   : > { %v776_v28 = vpop.permute.xlu1 %775 }
 0x3bc   : > { %v784_v11 = vadd.f32 1e-05, %v782_v27  ;;  %v781_v34 = vsub.f32 %v762_v22, %v776_v28 }
 0x3be   : > { %1788 = vrsqrt.f32 %v784_v11  ;;  %v783_v35 = vadd.f32 1e-05, %v781_v34  ;;  %v1038_v34 = vld [vmem:[#allocation8 + $0x8] sm:$0xff] }
 0x3bf   : > { %1610 = vmatprep.mubr.msk.f32.mxu1 %vm689_vm13, %v1038_v34 }
 0x3c0   : > { %1790 = vrsqrt.f32 %v783_v35  ;;  %v2100_v35 = vmov 3  }
 0x3c6   : > { %v790_v57 = vpop.permute.xlu0 %789 }
 0x3c7   : > { %v797_v61 = vsub.f32 %v2534_v51, %v790_v57 }
 0x3c8   : > { %v795_v40 = vpop.permute.xlu1 %794 }
 0x3c9   : > { %v799_v42 = vsub.f32 %v2532_v49, %v795_v40  ;;  %v800_v43 = vsub.f32 %v2536_v52, %v795_v40  ;;  %v798_v49 = vsub.f32 %v2530_v48, %v790_v57 }
 0x3cb   : > { %v1789_v2 = vpop.eup %1788 }
 0x3cc   : > { %v802_v36 = vmul.f32 %v1789_v2, %v2368_v5 }
 0x3cd   : > { %v1791_v1 = vpop.eup %1790 }
 0x3ce   : > { %810 = vperm.xlu1 %1774, %v802_v36   ;;  %v801_v37 = vmul.f32 %v1791_v1, %v2366_v4 }
 0x3d0   : > { %805 = vperm.xlu0 %1775, %v801_v37  }
 0x3d2   : > { %1776 = vset.pattern.permute.xlu1 %v2099_v38 }
 0x3d3   : > { %822 = vperm.xlu1 %1776, %v2368_v5  }
 0x3d4   : > { %1777 = vset.pattern.permute.xlu0 %v2100_v35 }
 0x3d7   : > { %818 = vperm.xlu1 %1776, %v2366_v4  }
 0x3db   : > { %1778 = vset.pattern.permute.xlu1 %v2100_v35 }
 0x449   : > { %v811_v41 = vpop.permute.xlu1 %810 }
 0x44a   : > { %v815_v44 = vmul.f32 %v811_v41, %v799_v42  ;;  %v816_v45 = vmul.f32 %v811_v41, %v800_v43 }
 0x44b   : > { %v806_v59 = vpop.permute.xlu0 %805 }
 0x44c   : > { %v813_v6 = vmul.f32 %v806_v59, %v797_v61  ;;  %v814_v7 = vmul.f32 %v806_v59, %v798_v49 }
 0x44e   : > { %v823_v46 = vpop.permute.xlu1 %822 }
 0x44f   : > { %v827_v47 = vadd.f32 %v823_v46, %v815_v44  ;;  %v828_v50 = vadd.f32 %v823_v46, %v816_v45 }
 0x451   : > { %v1608_v53 = vmul.f32 -1.442695, %v827_v47  ;;  %v1609_v56 = vmul.f32 -1.442695, %v828_v50 }
 0x452   : > { %v819_v52 = vpop.permute.xlu1 %818 }
 0x453   : > { %1792 = vpow2.f32 %v1608_v53  ;;  %v825_v9 = vadd.f32 %v819_v52, %v813_v6  ;;  %v826_v10 = vadd.f32 %v819_v52, %v814_v7 }
 0x454   : > { %1794 = vpow2.f32 %v1609_v56 }
 0x455   : > { %v1606_v12 = vmul.f32 -1.442695, %v825_v9  ;;  %v1607_v13 = vmul.f32 -1.442695, %v826_v10 }
 0x460   : > { %v1793_v58 = vpop.eup %1792 }
 0x461   : > { %v1795_v60 = vpop.eup %1794  ;;  %v843_v62 = vadd.f32 1.0, %v1793_v58 }
 0x462   : > { %v844_v63 = vadd.f32 1.0, %v1795_v60 }
 0x463   : > { %1796 = vrcp.f32 %v843_v62 }
 0x464   : > { %1798 = vrcp.f32 %v844_v63 }
 0x465   : > { %1800 = vpow2.f32 %v1606_v12 }
 0x466   : > { %1802 = vpow2.f32 %v1607_v13 }
 0x470   : > { %v1797_v14 = vpop.eup %1796 }
 0x471   : > { %v1799_v15 = vpop.eup %1798  ;;  %v2581_v20 = vmul.f32 %v1797_v14, %v827_v47 }
 0x472   : > { %v2583_v51 = vmul.f32 %v1799_v15, %v828_v50  ;;  %v1801_v48 = vpop.eup %1800 }
 0x473   : > { %995 = vrot.lane.b32.xlu0 %v2581_v20, %s2093_s9  ;;  %v1803_v21 = vpop.eup %1802  ;;  %v841_v22 = vadd.f32 1.0, %v1801_v48 }
 0x474   : > { %999 = vrot.lane.b32.xlu1 %v2583_v51, %s2093_s9  ;;  %v842_v23 = vadd.f32 1.0, %v1803_v21 }
 0x475   : > { %1804 = vrcp.f32 %v841_v22 }
 0x476   : > { %1806 = vrcp.f32 %v842_v23 }
 0x477   : > { %1007 = vrot.lane.b32.xlu0 %v2581_v20, %s2094_s18 }
 0x478   : > { %1011 = vrot.lane.b32.xlu1 %v2583_v51, %s2094_s18 }
 0x47b   : > { %859 = vrot.lane.b32.xlu0 %v2581_v20, %s2090_s28 }
 0x47c   : > { %863 = vrot.lane.b32.xlu1 %v2583_v51, %s2090_s28 }
 0x47f   : > { %871 = vrot.lane.b32.xlu0 %v2581_v20, %s2089_s1 }
 0x480   : > { %875 = vrot.lane.b32.xlu1 %v2583_v51, %s2089_s1 }
 0x482   : > { %v1805_v26 = vpop.eup %1804 }
 0x483   : > { %887 = vrot.lane.b32.xlu0 %v2581_v20, %s2091_s29  ;;  %v1807_v27 = vpop.eup %1806  ;;  %v2617_v28 = vmul.f32 %v1805_v26, %v825_v9 }
 0x484   : > { %891 = vrot.lane.b32.xlu1 %v2583_v51, %s2091_s29  ;;  %v2619_v11 = vmul.f32 %v1807_v27, %v826_v10 }
 0x487   : > { %899 = vrot.lane.b32.xlu0 %v2581_v20, %s2092_s16 }
 0x488   : > { %903 = vrot.lane.b32.xlu1 %v2583_v51, %s2092_s16 }
 0x48b   : > { %955 = vrot.lane.b32.xlu0 %v2581_v20, %s2095_s19 }
 0x48c   : > { %959 = vrot.lane.b32.xlu1 %v2583_v51, %s2095_s19 }
 0x48f   : > { %967 = vrot.lane.b32.xlu0 %v2581_v20, %s2096_s14 }
 0x490   : > { %971 = vrot.lane.b32.xlu1 %v2583_v51, %s2096_s14 }
 0x493   : > { %993 = vrot.lane.b32.xlu0 %v2617_v28, %s2093_s9 }
 0x494   : > { %997 = vrot.lane.b32.xlu1 %v2619_v11, %s2093_s9  ;;  %s1447_s9 = scalar_lea.sflag [#allocation5], %s2307_s7 }
 0x497   : > { %1005 = vrot.lane.b32.xlu0 %v2617_v28, %s2094_s18 }
 0x498   : > { %1009 = vrot.lane.b32.xlu1 %v2619_v11, %s2094_s18 }
 0x49b   : > { %857 = vrot.lane.b32.xlu0 %v2617_v28, %s2090_s28 }
 0x49c   : > { %861 = vrot.lane.b32.xlu1 %v2619_v11, %s2090_s28 }
 0x49f   : > { %869 = vrot.lane.b32.xlu0 %v2617_v28, %s2089_s1 }
 0x4a0   : > { %873 = vrot.lane.b32.xlu1 %v2619_v11, %s2089_s1  ;;  %s1627_s1 = sshll.u32 %s2166_s27, 9  ;;  %s2108_s27 = smov [#allocation14]  }
 0x4a3   : > { %885 = vrot.lane.b32.xlu0 %v2617_v28, %s2091_s29 }
 0x4a4   : > { %889 = vrot.lane.b32.xlu1 %v2619_v11, %s2091_s29 }
 0x4a7   : > { %897 = vrot.lane.b32.xlu0 %v2617_v28, %s2092_s16 }
 0x4a8   : > { %901 = vrot.lane.b32.xlu1 %v2619_v11, %s2092_s16  ;;  %s2992_s16 = scalar_lea.hbm %s3042_s6, %s1627_s1 }
 0x4ab   : > { %953 = vrot.lane.b32.xlu0 %v2617_v28, %s2095_s19 }
 0x4ac   : > { %957 = vrot.lane.b32.xlu1 %v2619_v11, %s2095_s19  ;;  %s2000_s19 = scalar_lea.vmem %s2987_s11, 512 }
 0x4ad   : > { %p2001_p0 = scmp.ne.s32.totalorder %s2987_s11, %s2000_s19 }
 0x4af   : > { %965 = vrot.lane.b32.xlu0 %v2617_v28, %s2096_s14  ;;  %p2002_p8 = pnand %p2001_p0, %p3098_p2 }
 0x4b0   : > { %969 = vrot.lane.b32.xlu1 %v2619_v11, %s2096_s14 }
 0x4b1   : > { %p2003_p9 = pneg %p2002_p8 }
 0x4b3   : > { %1082 = vperm.xlu0 %1777, %v2368_v5  }
 0x4b4   : > { %1078 = vperm.xlu1 %1778, %v2366_v4  }
 0x4b7   : > { %1780 = vset.pattern.permute.xlu0 %v2088_v0 }
 0x4b8   : > { %1779 = vset.pattern.permute.xlu1 %v2088_v0 }
 0x4e5   : > { %v996_v2 = vpop.permute.xlu0 %995 }
 0x4e6   : > { %v1000_v36 = vpop.permute.xlu1 %999 }
 0x4e7   : > { %v1002_v38 = vsel %vm500_vm9, %v996_v2, %v1000_v36  ;;  %v2662_v40 = vsel %vm500_vm9, %v1000_v36, %v996_v2 }
 0x4e9   : > { %v1008_v1 = vpop.permute.xlu0 %1007 }
 0x4ea   : > { %v1012_v37 = vpop.permute.xlu1 %1011 }
 0x4eb   : > { %v2666_v41 = vsel %vm507_vm10, %v1008_v1, %v1012_v37  ;;  %v1016_v42 = vsel %vm507_vm10, %v1012_v37, %v1008_v1 }
 0x4ec   : > { %v1028_v0 = vsel %vm2413_vm7, %v2666_v41, %v2662_v40  ;;  %v1027_v43 = vsel %vm464_vm8, %v1016_v42, %v1002_v38  ;;  %v2682_v45 = vsel %vm416_vm0, %v1002_v38, %v1016_v42 }
 0x4ed   : > { %1091 = vmatprep.subr.mxu1 %v1028_v0  ;;  %v860_v46 = vpop.permute.xlu0 %859 }
 0x4ee   : > { %1092 = vmatpush1.msra.mxu1 %v1027_v43  ;;  %v864_v47 = vpop.permute.xlu1 %863 }
 0x4ef   : > { %v2732_v27 = vsel %vm353_vm2, %v864_v47, %v860_v46  ;;  %v2750_v36 = vsel %vm353_vm2, %v860_v46, %v864_v47 }
 0x4f1   : > { %v872_v50 = vpop.permute.xlu0 %871 }
 0x4f2   : > { %v876_v53 = vpop.permute.xlu1 %875 }
 0x4f3   : > { %v2698_v12 = vsel %vm360_vm1, %v872_v50, %v876_v53  ;;  %v2702_v13 = vsel %vm360_vm1, %v876_v53, %v872_v50 }
 0x4f4   : > { %v2756_v37 = vsel %vm2452_vm11, %v2732_v27, %v2702_v13  ;;  %v2766_v0 = vsel %vm380_vm12, %v2750_v36, %v2698_v12 }
 0x4f5   : > { %v888_v56 = vpop.permute.xlu0 %887 }
 0x4f6   : > { %v892_v57 = vpop.permute.xlu1 %891 }
 0x4f7   : > { %v2690_v7 = vsel %vm388_vm3, %v888_v56, %v892_v57  ;;  %v2706_v14 = vsel %vm388_vm3, %v892_v57, %v888_v56 }
 0x4f9   : > { %v900_v58 = vpop.permute.xlu0 %899 }
 0x4fa   : > { %v904_v59 = vpop.permute.xlu1 %903 }
 0x4fb   : > { %v2686_v6 = vsel %vm395_vm4, %v900_v58, %v904_v59  ;;  %v2694_v9 = vsel %vm395_vm4, %v904_v59, %v900_v58 }
 0x4fc   : > { %v2712_v48 = vsel %vm2452_vm11, %v2690_v7, %v2686_v6  ;;  %v2746_v2 = vsel %vm380_vm12, %v2706_v14, %v2694_v9 }
 0x4fd   : > { %v956_v60 = vpop.permute.xlu0 %955  ;;  %v940_v42 = vsel %vm2413_vm7, %v2712_v48, %v2756_v37  ;;  %v939_v43 = vsel %vm464_vm8, %v2746_v2, %v2766_v0 }
 0x4fe   : > { %v960_v61 = vpop.permute.xlu1 %959 }
 0x501   : > { %v968_v62 = vpop.permute.xlu0 %967 }
 0x502   : > { %v972_v49 = vpop.permute.xlu1 %971 }
 0x503   : > { %v974_v59 = vsel %vm3080_vm6, %v968_v62, %v972_v49 }
 0x505   : > { %v994_v63 = vpop.permute.xlu0 %993 }
 0x506   : > { %v998_v52 = vpop.permute.xlu1 %997 }
 0x507   : > { %v2716_v21 = vsel %vm500_vm9, %v994_v63, %v998_v52  ;;  %v2720_v22 = vsel %vm500_vm9, %v998_v52, %v994_v63 }
 0x509   : > { %v1006_v10 = vpop.permute.xlu0 %1005 }
 0x50a   : > { %v1010_v15 = vpop.permute.xlu1 %1009 }
 0x50b   : > { %v2724_v23 = vsel %vm507_vm10, %v1006_v10, %v1010_v15  ;;  %v2728_v26 = vsel %vm507_vm10, %v1010_v15, %v1006_v10 }
 0x50c   : > { %v1026_v34 = vsel %vm2413_vm7, %v2724_v23, %v2720_v22  ;;  %v1025_v35 = vsel %vm464_vm8, %v2728_v26, %v2716_v21  ;;  %v1018_v31 = vsel %vm2502_vm15, %v2720_v22, %v2724_v23 }
 0x50d   : > { %1093 = vmatprep.subr.mxu1 %v1026_v34  ;;  %v858_v1 = vpop.permute.xlu0 %857 }
 0x50e   : > { %1094 = vmatpush1.msra.mxu1 %v1025_v35  ;;  %v862_v38 = vpop.permute.xlu1 %861 }
 0x50f   : > { %1095 = vmatprep.subr.mxu1 %v940_v42  ;;  %v865_v63 = vsel %vm353_vm2, %v858_v1, %v862_v38  ;;  %v867_v52 = vsel %vm353_vm2, %v862_v38, %v858_v1  ;;  %vm3082_vm2 = vcmp.lt.s32.totalorder %v2383_v18, 127 }
 0x510   : > { %1096 = vmatpush1.msra.mxu1 %v939_v43  ;;  %vm3085_vm9 = vmmov %vm3082_vm2 }
 0x511   : > { %v870_v46 = vpop.permute.xlu0 %869  ;;  %vm3086_vm10 = vmmov %vm3082_vm2 }
 0x512   : > { %v874_v47 = vpop.permute.xlu1 %873 }
 0x513   : > { %v2774_v56 = vsel %vm360_vm1, %v870_v46, %v874_v47  ;;  %v879_v57 = vsel %vm360_vm1, %v874_v47, %v870_v46  ;;  %vm3081_vm1 = vmmov %vm3080_vm6 }
 0x514   : > { %v2794_v43 = vsel %vm2452_vm11, %v867_v52, %v879_v57  ;;  %v2803_v38 = vsel %vm380_vm12, %v865_v63, %v2774_v56  ;;  %v976_v47 = vsel %vm3081_vm1, %v972_v49, %v968_v62  ;;  %vm3087_vm6 = vmmov %vm3081_vm1 }
 0x515   : > { %v886_v50 = vpop.permute.xlu0 %885 }
 0x516   : > { %v890_v53 = vpop.permute.xlu1 %889 }
 0x517   : > { %v893_v15 = vsel %vm388_vm3, %v886_v50, %v890_v53  ;;  %v895_v34 = vsel %vm388_vm3, %v890_v53, %v886_v50  ;;  %vm3083_vm3 = vmmov %vm3082_vm2 }
 0x518   : > { %v962_v44 = vsel %vm3083_vm3, %v956_v60, %v960_v61 }
 0x519   : > { %v898_v58 = vpop.permute.xlu0 %897 }
 0x51a   : > { %v902_v10 = vpop.permute.xlu1 %901 }
 0x51b   : > { %v905_v35 = vsel %vm395_vm4, %v898_v58, %v902_v10  ;;  %v907_v42 = vsel %vm395_vm4, %v902_v10, %v898_v58  ;;  %v964_v10 = vsel %vm3082_vm2, %v960_v61, %v956_v60  ;;  %vm3084_vm4 = vcmp.eq.s32.totalorder %v2387_v24, 1 }
 0x51c   : > { %v2798_v1 = vsel %vm2452_vm11, %v893_v15, %v905_v35  ;;  %v2807_v46 = vsel %vm380_vm12, %v895_v34, %v907_v42  ;;  %v988_v62 = vsel %vm2399_vm5, %v974_v59, %v964_v10  ;;  %v987_v49 = vsel %vm3084_vm4, %v976_v47, %v962_v44  ;;  %vm3088_vm2 = vmmov %vm3084_vm4 }
 0x51d   : > { %v954_v50 = vpop.permute.xlu0 %953  ;;  %v938_v53 = vsel %vm2413_vm7, %v2798_v1, %v2794_v43  ;;  %v937_v58 = vsel %vm464_vm8, %v2807_v46, %v2803_v38  ;;  %v980_v18 = vsel %vm2452_vm11, %v964_v10, %v974_v59  ;;  %vm3089_vm3 = vmmov %vm3088_vm2  ;;  %v1017_v24 = vsel %vm416_vm0, %v2716_v21, %v2728_v26  ;;  %v1040_v26 = vld [vmem:[#allocation8 + $0x18] sm:$0xff] }
 0x51e   : > { %1097 = vmatprep.subr.mxu1 %v938_v53  ;;  %v958_v25 = vpop.permute.xlu1 %957  ;;  %vm3091_vm4 = vmmov %vm3088_vm2 }
 0x51f   : > { %1098 = vmatpush1.msra.mxu1 %v937_v58  ;;  %v961_v17 = vsel %vm3085_vm9, %v954_v50, %v958_v25  ;;  %v963_v53 = vsel %vm3086_vm10, %v958_v25, %v954_v50  ;;  %v925_v54 = vsel %vm3091_vm4, %v907_v42, %v895_v34 }
 0x520   : > { %1099 = vmatprep.subr.mxu1 %v988_v62 }
 0x521   : > { %1100 = vmatpush1.msra.mxu1 %v987_v49  ;;  %v966_v8 = vpop.permute.xlu0 %965 }
 0x522   : > { %v970_v19 = vpop.permute.xlu1 %969 }
 0x523   : > { %v973_v60 = vsel %vm3087_vm6, %v966_v8, %v970_v19  ;;  %v975_v61 = vsel %vm3081_vm1, %v970_v19, %v966_v8  ;;  %v979_v19 = vsel %vm380_vm12, %v962_v44, %v976_v47  ;;  %v928_v8 = vsel %vm2399_vm5, %v2686_v6, %v2690_v7 }
 0x524   : > { %v986_v58 = vsel %vm2399_vm5, %v973_v60, %v963_v53  ;;  %v985_v62 = vsel %vm3088_vm2, %v975_v61, %v961_v17  ;;  %v978_v25 = vsel %vm2452_vm11, %v963_v53, %v973_v60  ;;  %vm3090_vm11 = vmmov %vm3088_vm2  ;;  %v922_v6 = vsel %vm2399_vm5, %v879_v57, %v867_v52 }
 0x525   : > { %1101 = vmatprep.subr.mxu1 %v986_v58  ;;  %v923_v44 = vsel %vm3090_vm11, %v2698_v12, %v2750_v36 }
 0x526   : > { %1102 = vmatpush1.msra.mxu1 %v985_v62  ;;  %v3094_v62 = vmov 1  }
 0x527   : > { %1103 = vmatprep.subr.mxu1 %v2583_v51  ;;  %v977_v51 = vsel %vm380_vm12, %v961_v17, %v975_v61  ;;  %vm3092_vm12 = vmmov %vm3088_vm2 }
 0x528   : > { %1104 = vmatpush1.msra.mxu1 %v2581_v20  ;;  %v927_v20 = vsel %vm3089_vm3, %v2694_v9, %v2706_v14  ;;  %v921_v9 = vsel %vm3092_vm12, %v2774_v56, %v865_v63  ;;  %v913_v14 = vsel %vm416_vm0, %v2803_v38, %v2807_v46 }
 0x529   : > { %1105 = vmatprep.subr.mxu1 %v2619_v11  ;;  %v926_v11 = vsel %vm2399_vm5, %v905_v35, %v893_v15  ;;  %v931_v17 = vsel %vm416_vm0, %v923_v44, %v927_v20  ;;  %v929_v12 = vsel %vm416_vm0, %v921_v9, %v925_v54  ;;  %v947_v21 = vsel %vm464_vm8, %v927_v20, %v923_v44 }
 0x52a   : > { %1106 = vmatpush1.msra.mxu1 %v2617_v28  ;;  %v924_v28 = vsel %vm2399_vm5, %v2702_v13, %v2732_v27  ;;  %v930_v7 = vsel %vm2502_vm15, %v922_v6, %v926_v11  ;;  %v3093_v13 = vsel %vm2502_vm15, %v2662_v40, %v2666_v41  ;;  %v916_v40 = vsel %vm2502_vm15, %v2756_v37, %v2712_v48 }
 0x52b   : > { %1107 = vmatprep.subr.mxu1 %v980_v18  ;;  %v932_v55 = vsel %vm2502_vm15, %v924_v28, %v928_v8  ;;  %v915_v41 = vsel %vm416_vm0, %v2766_v0, %v2746_v2  ;;  %v948_v48 = vsel %vm2413_vm7, %v928_v8, %v924_v28  ;;  %v946_v22 = vsel %vm2413_vm7, %v926_v11, %v922_v6 }
 0x52c   : > { %1108 = vmatpush1.msra.mxu1 %v979_v19  ;;  %v945_v23 = vsel %vm464_vm8, %v925_v54, %v921_v9  ;;  %v2102_v18 = vmov 5   ;;  %vm1336_vm5 = vcmask 80960   ;;  %vm1375_vm7 = vcmask 15360  }
 0x52d   : > { %1109 = vmatprep.subr.mxu1 %v978_v25 }
 0x52e   : > { %1110 = vmatpush1.msra.mxu1 %v977_v51  ;;  %v1083_v36 = vpop.permute.xlu0 %1082 }
 0x52f   : > { %1111 = vmatprep.subr.mxu1 %v932_v55  ;;  %v1079_v0 = vpop.permute.xlu1 %1078 }
 0x530   : > { %1112 = vmatpush1.msra.mxu1 %v931_v17  ;;  %v2953_v17 = vld [vmem:[#allocation12 + $0x8] sm:$0xff] }
 0x531   : > { %1113 = vmatprep.subr.mxu1 %v930_v7 }
 0x532   : > { %1114 = vmatpush1.msra.mxu1 %v929_v12 }
 0x533   : > { %1115 = vmatprep.subr.mxu1 %v3093_v13 }
 0x534   : > { %1116 = vmatpush1.msra.mxu1 %v2682_v45  ;;  %v914_v45 = vsel %vm2502_vm15, %v2794_v43, %v2798_v1 }
 0x535   : > { %1117 = vmatprep.subr.mxu1 %v1018_v31 }
 0x536   : > { %1118 = vmatpush1.msra.mxu1 %v1017_v24 }
 0x537   : > { %1119 = vmatprep.subr.mxu1 %v916_v40 }
 0x538   : > { %1120 = vmatpush1.msra.mxu1 %v915_v41 }
 0x539   : > { %1121 = vmatprep.subr.mxu1 %v914_v45 }
 0x53a   : > { %1122 = vmatpush1.msra.mxu1 %v913_v14 }
 0x53b   : > { %1151 = vmatprep.subr.mxu1 %v948_v48 }
 0x53c   : > { %1152 = vmatpush2.msra.mxu1 %v947_v21 }
 0x53d   : > { %1153 = vmatprep.subr.mxu1 %v946_v22 }
 0x53e   : > { %1154 = vmatpush2.msra.mxu1 %v945_v23 }
 0x53f   : > { %1156 = vmatmul.mubr.f32.vlgmr.msra.gmra.mxu1 %v1037_v33 }
 0x540   : > { %1611 = vmatprep.mubr.msk.f32.mxu1 %vm689_vm13, %v1040_v26 }
 0x543   : > { %1162 = vmatmul.mubr.f32.gmra.mxu1 %v1039_v32 }
 0x5ff   : > { %v1157_v27 = vpop.f32.mrf.mxu1 }
 0x600   : > { %v2929_v29 = vadd.f32 %v1157_v27, %v1079_v0 }
 0x601   : > { %v1159_v2 = vpop.f32.mrf.mxu1 }
 0x602   : > { %v2925_v39 = vadd.f32 %v1159_v2, %v1079_v0  ;;  %v1174_v42 = vmul.f32 %v2929_v29, %v2929_v29  ;;  %v1841_v2 = vld [vmem:[#allocation12] sm:$0xff] }
 0x603   : > { %v1163_v37 = vpop.f32.mrf.mxu1 }
 0x604   : > { %v2923_v56 = vadd.f32 %v1163_v37, %v1083_v36  ;;  %v1175_v34 = vmul.f32 %v2925_v39, %v2925_v39  ;;  %v1168_v1 = vadd.f32 %v2925_v39, %v2929_v29 }
 0x605   : > { %v1165_v57 = vpop.f32.mrf.mxu1 }
 0x606   : > { %v2927_v59 = vadd.f32 %v1165_v57, %v1083_v36  ;;  %v1176_v63 = vmul.f32 %v2923_v56, %v2923_v56  ;;  %v1178_v43 = vadd.f32 %v1175_v34, %v1174_v42 }
 0x608   : > { %v1177_v52 = vmul.f32 %v2927_v59, %v2927_v59  ;;  %v1171_v15 = vadd.f32 %v2927_v59, %v2923_v56 }
 0x60a   : > { %v1181_v35 = vadd.f32 %v1177_v52, %v1176_v63  ;;  %1172 = vadd.xlane.f32.xlu1 %v1171_v15 }
 0x60c   : > { %1182 = vadd.xlane.f32.xlu0 %v1181_v35 }
 0x60e   : > { %1179 = vadd.xlane.f32.xlu1 %v1178_v43 }
 0x610   : > { %1169 = vadd.xlane.f32.xlu0 %v1168_v1 }
 0x693   : > { %v1173_v38 = vpop.xlane.xlu1 %1172 }
 0x695   : > { %v1183_v46 = vpop.xlane.xlu0 %1182 }
 0x696   : > { %v1185_v47 = vsel %vm686_vm14, %v1173_v38, %v1183_v46 }
 0x697   : > { %1643 = vmatprep.subr.mxu0 %v1185_v47  ;;  %v1180_v10 = vpop.xlane.xlu1 %1179 }
 0x698   : > { %1644 = vmatpush3.msra.mxu0 %v1185_v47 }
 0x699   : > { %v1170_v50 = vpop.xlane.xlu0 %1169 }
 0x69a   : > { %v1184_v49 = vsel %vm686_vm14, %v1170_v50, %v1180_v10 }
 0x69b   : > { %1645 = vmatprep.subr.mxu0 %v1184_v49 }
 0x69c   : > { %1646 = vmatpush3.msra.mxu0 %v1184_v49 }
 0x69d   : > { %1648 = vmatmul.mubr.msk.f32.vlgmr.msra.gmra.mxu0 %vm689_vm13, %v2556_v16 }
 0x75d   : > { %v1649_v53 = vpop.f32.mrf.mxu0 }
 0x75e   : > { %v1262_v60 = vmul.f32 %v1649_v53, %v1649_v53 }
 0x75f   : > { %v1252_v61 = vpop.f32.mrf.mxu0 }
 0x760   : > { %v1261_v58 = vmul.f32 %v1252_v61, %v1252_v61  ;;  %1267 = vrot.lane.b32.xlu1 %v1262_v60, %s2096_s14  ;;  %v2105_v60 = vmov 6  }
 0x762   : > { %1265 = vrot.lane.b32.xlu0 %v1261_v58, %s2096_s14  ;;  %s2004_s14 = sshll.u32 %s2108_s27, 4  ;;  %s2005_s14 = int_to_ptr.vmem [resolvable:$false] %s2004_s14 }
 0x763   : > { %p2007_p12 = scmp.lt.s32.totalorder %s2987_s11, %s2005_s14 }
 0x764   : > { %1291 = vrot.lane.b32.xlu1 %v2366_v4, %s2101_s8 }
 0x766   : > { %1293 = vrot.lane.b32.xlu0 %v2368_v5, %s2101_s8  ;;  %s2006_s8 = scalar_lea.vmem %s2005_s14, 1024 }
 0x767   : > { %p2008_p3 = scmp.lt.s32.totalorder %s2006_s8, %s2000_s19 }
 0x768   : > { %1279 = vperm.xlu1 %1779, %v1252_v61  }
 0x769   : > { %p2009_p4 = por %p2008_p3, %p2007_p12 }
 0x76a   : > { %1284 = vperm.xlu0 %1780, %v1649_v53  }
 0x76b   : > { %p2010_p1 = pnand %p2009_p4, %p2003_p9 }
 0x76c   : > { %1782 = vset.pattern.permute.xlu1 %v3094_v62 }
 0x76e   : > { %1781 = vset.pattern.permute.xlu0 %v2102_v18 }
 0x76f   : > { %1314 = vperm.xlu0 %1781, %v2366_v4  }
 0x773   : > { %1784 = vset.pattern.permute.xlu0 %v2105_v60 }
 0x7d2   : > { %v1268_v16 = vpop.permute.xlu1 %1267 }
 0x7d3   : > { %v1272_v19 = vsub.f32 %v1649_v53, %v1268_v16 }
 0x7d4   : > { %v1266_v8 = vpop.permute.xlu0 %1265 }
 0x7d5   : > { %v1274_v25 = vadd.f32 1e-05, %v1272_v19  ;;  %v1271_v20 = vsub.f32 %v1252_v61, %v1266_v8 }
 0x7d6   : > { %v1292_v44 = vpop.permute.xlu1 %1291 }
 0x7d7   : > { %1808 = vrsqrt.f32 %v1274_v25  ;;  %v1273_v51 = vadd.f32 1e-05, %v1271_v20 }
 0x7d8   : > { %v1294_v11 = vpop.permute.xlu0 %1293 }
 0x7d9   : > { %1810 = vrsqrt.f32 %v1273_v51 }
 0x7e3   : > { %v1280_v4 = vpop.permute.xlu1 %1279 }
 0x7e4   : > { %v1809_v28 = vpop.eup %1808  ;;  %v1287_v9 = vsub.f32 %v2929_v29, %v1280_v4  ;;  %v1288_v12 = vsub.f32 %v2925_v39, %v1280_v4 }
 0x7e5   : > { %v1298_v55 = vmul.f32 %v1809_v28, %v1294_v11  ;;  %v1285_v6 = vpop.permute.xlu0 %1284 }
 0x7e6   : > { %v1811_v5 = vpop.eup %1810  ;;  %v1289_v41 = vsub.f32 %v2923_v56, %v1285_v6  ;;  %v1290_v45 = vsub.f32 %v2927_v59, %v1285_v6 }
 0x7e7   : > { %1306 = vperm.xlu1 %1782, %v1298_v55   ;;  %v1297_v54 = vmul.f32 %v1811_v5, %v1292_v44 }
 0x7ea   : > { %v1315_v31 = vpop.permute.xlu0 %1314 }
 0x7eb   : > { %1301 = vperm.xlu1 %1782, %v1297_v54  }
 0x7ef   : > { %1783 = vset.pattern.permute.xlu1 %v2102_v18 }
 0x7f0   : > { %1318 = vperm.xlu1 %1783, %v2953_v17  }
 0x7f4   : > { %1785 = vset.pattern.permute.xlu1 %v2105_v60 }
 0x862   : > { %v1307_v7 = vpop.permute.xlu1 %1306 }
 0x863   : > { %v1311_v21 = vmul.f32 %v1307_v7, %v1289_v41  ;;  %v1312_v22 = vmul.f32 %v1307_v7, %v1290_v45 }
 0x866   : > { %v1302_v13 = vpop.permute.xlu1 %1301 }
 0x867   : > { %v1309_v24 = vmul.f32 %v1302_v13, %v1287_v9  ;;  %v1310_v40 = vmul.f32 %v1302_v13, %v1288_v12 }
 0x869   : > { %v2960_v14 = vadd.f32 %v1315_v31, %v1309_v24  ;;  %v2962_v48 = vadd.f32 %v1315_v31, %v1310_v40  ;;  %v3095_v31 = vld [vmem:[#allocation20_spill] sm:$0xff] }
 0x86b   : > { %v1319_v33 = vpop.permute.xlu1 %1318  ;;  %v1325_v23 = vadd.f32 %v2962_v48, %v2960_v14 }
 0x86c   : > { %v2966_v26 = vadd.f32 %v1319_v33, %v1311_v21  ;;  %v2968_v32 = vadd.f32 %v1319_v33, %v1312_v22  ;;  %v3096_v22 = vld [vmem:[#allocation21_spill] sm:$0xff] }
 0x86d   : > { %1326 = vadd.xlane.f32.xlu1 %v1325_v23  ;;  %v3097_v23 = vld [vmem:[#allocation22_spill] sm:$0xff] }
 0x86e   : > { %v1328_v27 = vadd.f32 %v2968_v32, %v2966_v26 }
 0x870   : > { %1329 = vadd.xlane.f32.xlu0 %v1328_v27 }
 0x886   : > { %1346 = vrot.lane.b32.xlu0 %v1841_v2, %s2103_s15 }
 0x8f6   : > { %v1327_v36 = vpop.xlane.xlu1 %1326 }
 0x8f7   : > { %v1332_v37 = vmul.f32 0.00390625, %v1327_v36 }
 0x8f9   : > { %v1330_v0 = vpop.xlane.xlu0 %1329  ;;  %v1334_v56 = vmul.f32 %v1841_v2, %v1332_v37 }
 0x8fa   : > { %v1333_v39 = vmul.f32 0.00390625, %v1330_v0 }
 0x8fb   : > { %v1337_v59 = vsel %vm1336_vm5, %v1334_v56, 0.0 }
 0x8fc   : > { %v1335_v57 = vmul.f32 %v2953_v17, %v1333_v39 }
 0x8fd   : > { %v1347_v43 = vpop.permute.xlu0 %1346 }
 0x8fe   : > { %v1338_v29 = vsel %vm1336_vm5, %v1335_v57, 0.0 }
 0x8ff   : > { %v1339_v63 = vadd.f32 %v1338_v29, %v1337_v59 }
 0x901   : > { %v1340_v52 = vrot.slane %v1339_v63, 4 }
 0x903   : > { %v1341_v15 = vadd.f32 %v1340_v52, %v1339_v63 }
 0x905   : > { %v1342_v34 = vrot.slane %v1341_v15, 2 }
 0x907   : > { %v1343_v35 = vadd.f32 %v1342_v34, %v1341_v15 }
 0x909   : > { %v1344_v42 = vrot.slane %v1343_v35, 1 }
 0x90b   : > { %v1345_v1 = vadd.f32 %v1344_v42, %v1343_v35 }
 0x90d   : > { %v1349_v38 = vadd.f32 %v1347_v43, %v1345_v1 }
 0x90f   : > { %v1614_v46 = vmul.f32 -1.442695, %v1349_v38 }
 0x911   : > { %1812 = vpow2.f32 %v1614_v46 }
 0x91e   : > { %v1813_v47 = vpop.eup %1812 }
 0x91f   : > { %v1353_v50 = vadd.f32 1.0, %v1813_v47 }
 0x921   : > { %1814 = vrcp.f32 %v1353_v50 }
 0x92e   : > { %v1815_v10 = vpop.eup %1814 }
 0x92f   : > { %v1356_v49 = vmul.f32 %v1815_v10, %v1349_v38 }
 0x931   : > { %v1360_v53 = vrot.slane %v1356_v49, %v2395_v30  ;;  %v2107_v30 = vmov 7  }
 0x933   : > { %1362 = vrot.lane.b32.xlu1 %v1360_v53, %s2104_s13 }
 0x9a5   : > { %v1363_v61 = vpop.permute.xlu1 %1362 }
 0x9a6   : > { %v1365_v58 = vmul.f32 %v1841_v2, %v1363_v61  ;;  %v1366_v62 = vmul.f32 %v2953_v17, %v1363_v61 }
 0x9a8   : > { %1371 = vrot.lane.b32.xlu0 %v1366_v62, %s2106_s17  ;;  %1369 = vrot.lane.b32.xlu1 %v1365_v58, %s2106_s17 }
 0xa1a   : > { %v1372_v18 = vpop.permute.xlu0 %1371  ;;  %v1370_v16 = vpop.permute.xlu1 %1369 }
 0xa1b   : > { %v1379_v19 = vsel %vm1375_vm7, %v1372_v18, 0.0  ;;  %v1376_v8 = vsel %vm1375_vm7, %v1370_v16, 0.0 }
 0xa1c   : > { %1380 = vadd.xlane.f32.xlu0 %v1379_v19  ;;  %1377 = vadd.xlane.f32.xlu1 %v1376_v8 }
 0xa2d   : > { %663 = vperm.xlu1 %1785, %v2953_v17  }
 0xa31   : > { %1786 = vset.pattern.permute.xlu1 %v2107_v30 }
 0xa32   : > { %659 = vperm.xlu0 %1784, %v1841_v2  }
 0xa36   : > { %1787 = vset.pattern.permute.xlu0 %v2107_v30 }
 0xaa5   : > { %v1381_v25 = vpop.xlane.xlu0 %1380  ;;  %v1378_v20 = vpop.xlane.xlu1 %1377 }
 0xaa6   : > { %v1383_v51 = vadd.f32 %v2953_v17, %v1381_v25  ;;  %v1382_v28 = vadd.f32 %v1841_v2, %v1378_v20 }
 0xaa8   : > { %v1616_v11 = vmul.f32 -1.442695, %v1383_v51  ;;  %v1615_v55 = vmul.f32 -1.442695, %v1382_v28 }
 0xaa9   : > { %v664_v9 = vpop.permute.xlu1 %663 }
 0xaaa   : > { %1816 = vpow2.f32 %v1616_v11  ;;  %v668_v33 = vadd.f32 %v664_v9, %v3096_v22  ;;  %v669_v27 = vadd.f32 %v664_v9, %v3097_v23 }
 0xaab   : > { %1818 = vpow2.f32 %v1615_v55 }
 0xaad   : > { %v660_v12 = vpop.permute.xlu0 %659 }
 0xaae   : > { %v666_v17 = vadd.f32 %v660_v12, %v2561_v3  ;;  %v667_v24 = vadd.f32 %v660_v12, %v3095_v31 }
 0xab7   : > { %v1817_v5 = vpop.eup %1816 }
 0xab8   : > { %v1819_v44 = vpop.eup %1818  ;;  %v1391_v4 = vadd.f32 1.0, %v1817_v5 }
 0xab9   : > { %v1390_v54 = vadd.f32 1.0, %v1819_v44 }
 0xabb   : > { %1820 = vrcp.f32 %v1390_v54 }
 0xabc   : > { %1822 = vrcp.f32 %v1391_v4 }
 0xac8   : > { %v1821_v6 = vpop.eup %1820 }
 0xac9   : > { %1398 = vperm.xlu1 %1786, %v1821_v6   ;;  %v1823_v7 = vpop.eup %1822 }
 0xacd   : > { %1403 = vperm.xlu1 %1786, %v1823_v7  }
 0xb44   : > { %v1399_v13 = vpop.permute.xlu1 %1398 }
 0xb45   : > { %v1406_v40 = vmul.f32 %v1399_v13, %v2960_v14  ;;  %v1407_v41 = vmul.f32 %v1399_v13, %v2962_v48 }
 0xb47   : > { %v1410_v45 = vadd.f32 %v1406_v40, %v666_v17  ;;  %v1411_v21 = vadd.f32 %v1407_v41, %v667_v24 }
 0xb48   : > { %v1404_v2 = vpop.permute.xlu1 %1403 }
 0xb49   : > { %v1617_v36 = vmul.f32 -1.442695, %v1410_v45  ;;  %v1618_v37 = vmul.f32 -1.442695, %v1411_v21  ;;  %v1408_v0 = vmul.f32 %v1404_v2, %v2966_v26  ;;  %v1409_v56 = vmul.f32 %v1404_v2, %v2968_v32 }
 0xb4b   : > { %1824 = vpow2.f32 %v1617_v36  ;;  %v1412_v3 = vadd.f32 %v1408_v0, %v668_v33  ;;  %v1413_v39 = vadd.f32 %v1409_v56, %v669_v27 }
 0xb4c   : > { %1826 = vpow2.f32 %v1618_v37 }
 0xb4d   : > { %v1619_v14 = vmul.f32 -1.442695, %v1412_v3  ;;  %v1620_v48 = vmul.f32 -1.442695, %v1413_v39 }
 0xb4f   : > { %1828 = vpow2.f32 %v1619_v14 }
 0xb50   : > { %1830 = vpow2.f32 %v1620_v48 }
 0xb58   : > { %v1825_v57 = vpop.eup %1824 }
 0xb59   : > { %v1827_v59 = vpop.eup %1826  ;;  %v1426_v29 = vadd.f32 1.0, %v1825_v57 }
 0xb5a   : > { %v1427_v63 = vadd.f32 1.0, %v1827_v59 }
 0xb5b   : > { %1832 = vrcp.f32 %v1426_v29 }
 0xb5c   : > { %v1829_v52 = vpop.eup %1828  ;;  %1834 = vrcp.f32 %v1427_v63 }
 0xb5d   : > { %v1831_v26 = vpop.eup %1830  ;;  %v1428_v15 = vadd.f32 1.0, %v1829_v52 }
 0xb5e   : > { %v1429_v32 = vadd.f32 1.0, %v1831_v26 }
 0xb5f   : > { %1836 = vrcp.f32 %v1428_v15 }
 0xb60   : > { %1838 = vrcp.f32 %v1429_v32 }
 0xb68   : > { %v1833_v34 = vpop.eup %1832 }
 0xb69   : > { %v1835_v35 = vpop.eup %1834  ;;  %v1438_v42 = vmul.f32 %v1833_v34, %v1410_v45 }
 0xb6a   : > { %v1439_v43 = vmul.f32 %v1835_v35, %v1411_v21 }
 0xb6b   : > { %1442 = vst [vmem:[%s338_s25] sm:$0xff] %v1438_v42 }
 0xb6c   : > { %v1837_v1 = vpop.eup %1836  ;;  %1443 = vst [vmem:[%s338_s25 + $0x8] sm:$0xff] %v1439_v43 }
 0xb6d   : > { %v1839_v38 = vpop.eup %1838  ;;  %v1440_v46 = vmul.f32 %v1837_v1, %v1412_v3 }
 0xb6e   : > { %v1441_v47 = vmul.f32 %v1839_v38, %v1413_v39 }
 0xb6f   : > { %1444 = vst [vmem:[%s338_s25 + $0x10] sm:$0xff] %v1440_v46 }
 0xb70   : > { %1445 = vst [vmem:[%s338_s25 + $0x18] sm:$0xff] %v1441_v47 }
 0xb71   : > { %2013 = shalt.err (!%p2010_p1)
}
 0xb72   : > { %s2014_s15 = scalar_lea.hbm %s2992_s16, 512  ;;  %s2018_s20 = scalar_lea.hbm %s3042_s6, 1024 }
 0xb73   : > { %p2015_p5 = scmp.ne.s32.totalorder %s2992_s16, %s2014_s15  ;;  %p2019_p11 = scmp.lt.s32.totalorder %s2992_s16, %s3042_s6 }
 0xb74   : > { %p2020_p7 = scmp.lt.s32.totalorder %s2018_s20, %s2014_s15 }
 0xb75   : > { %p2016_p6 = pnand %p2015_p5, %p3098_p2 }
 0xb76   : > { %p2021_p13 = por %p2020_p7, %p2019_p11 }
 0xb77   : > { %p2017_p10 = pneg %p2016_p6 }
 0xb79   : > { %p2022_p0 = pnand %p2021_p13, %p2017_p10 }
 0xb7b   : > { %2025 = shalt.err (!%p2022_p0)
}
 0xb7c   : > { %s2109_s28 = smov 256  }
 0xb7d   : > { %1672 = dma.vmem_to_hbm [thread:$0]  (%p3098_p2), %s2987_s11, 512, %s2992_s16, %s1447_s9, %s2109_s28, %s2109_s28, %s2094_s18  }
 0xb7e PF: > { %s1475_s29 = sand.u32 1, %s2064_s21   ;;  %p3099_p8 = scmp.ne.s32.totalorder %s3059_s30, 0 }
 0xb7f   : > { %p3100_p9 = scmp.ge.s32.totalorder %s2076_s24, 2  ;;  %s1476_s19 = scalar_lea.sflag [#allocation5], %s1475_s29 }
 0xb81   : > { %p1695_p12 = pnand %p3100_p9, %p3099_p8 }
 0xb83   : > { %p1696_p3 = pneg %p1695_p12 }
 0xb85   : > { %2059 = dma.done.wait (%p1696_p3), %s1476_s19, 512  }
 0xb86   : > { %2061 = vsyncadd (%p1696_p3), %s1476_s19, 4294966784  ;;  %p22_p4 = scmp.ge.s32.totalorder %s2250_s10, 4   ;;  %s3101_s21 = smov %s2068_s22 }
 0xb87   : > { %s3102_s22 = smov %s2072_s23  ;;  %s3103_s23 = smov %s2262_s26 }
 0xb88   : > { %s3104_s24 = smov %s2250_s10  ;;  %24 = sbr.rel (!%p22_p4) target bundleno = 10 (0xa), region = 109 }
 0xb8d   :  { %1481 = vsyncpa [#allocation4], 1 }
 0xb8e   :  { %1483 = vsyncpa [#allocation4 + $0x1], 1 }
 0xb8f   :  { %1484 = vsyncpa [#allocation7], 1 }
 0xb90   :  { %1485 = vsyncpa [#allocation10], 1 }
 0xb91   :  { %1486 = vsyncpa [#allocation13], 1 }
 0xb92   :  { %1487 = vsyncpa [#allocation5], 1 }
 0xb93   :  { %1489 = vsyncpa [#allocation5 + $0x1], 1 }

</bundles_post_ra>
